<compile_context>
chip_gen: v7x
topology: tpu7x:2x2x1
jax: 0.10.0
libtpu: 0.0.40
codegen_flags: <defaults>
</compile_context>

<pallas_src>
import functools

import jax
import jax.numpy as jnp
from jax import lax
from jax.experimental import pallas as pl
from jax.experimental.pallas import tpu as pltpu

EPS = 1e-5
EXPANSION = 4
# Small per-block working sets; 32 MiB scoped VMEM is safe on v5e/v6e/v7x.
# (On v5e/v6e this could be raised to 64-96 MiB for deeper buffering.)
VMEM_LIMIT = 32 * 1024 * 1024


def _compiler_params(n_grid_dims):
    return pltpu.CompilerParams(
        dimension_semantics=("parallel",) * n_grid_dims,
        vmem_limit_bytes=VMEM_LIMIT)


def _row_tile(m, target=1024, min_steps=4):
    """Largest 8-aligned divisor of m <= target that still leaves >=min_steps
    grid steps (so v7x's two TensorCores both get work)."""
    cands = [t for t in (1024, 512, 256, 128, 64, 32, 16, 8)
             if t <= target and t <= m and m % t == 0]
    for t in cands:
        if m // t >= min_steps:
            return t
    return cands[-1] if cands else m


def _h_tile(n_imgs, h, min_steps=8):
    """Scanline-chunk size for the 3x3 conv: largest divisor of H that yields
    >= min_steps total grid steps across the batch."""
    for t in sorted((d for d in range(1, h + 1) if h % d == 0), reverse=True):
        if n_imgs * (h // t) >= min_steps:
            return t
    return 1


# ------------------------------ kernel bodies ------------------------------

def _pack_stats(y):
    """Per-channel partial BN stats: row 0 = sum, row 1 = sum of squares."""
    s = jnp.sum(y, axis=0, keepdims=True)
    q = jnp.sum(y * y, axis=0, keepdims=True)
    row = lax.broadcasted_iota(jnp.int32, (2, y.shape[-1]), 0)
    return jnp.where(row == 0, s, q)


def _conv1x1_stats_kernel(x_ref, w_ref, y_ref, stats_ref):
    # 1x1 conv == channel matmul on the MXU (bf16 inputs, f32 accumulate).
    xb = x_ref[...].astype(jnp.bfloat16)
    y = jnp.dot(xb, w_ref[...], preferred_element_type=jnp.float32)
    y_ref[...] = y.astype(y_ref.dtype)
    stats_ref[...] = _pack_stats(y)


def _bn_relu_conv1x1_stats_kernel(x_ref, scale_ref, shift_ref, w_ref,
                                  y_ref, stats_ref):
    # Fused: BN(previous stage) apply + ReLU (f32), 1x1 conv (bf16 MXU),
    # BN partials of this stage (f32).
    a = jnp.maximum(
        x_ref[...].astype(jnp.float32) * scale_ref[...] + shift_ref[...], 0.0)
    y = jnp.dot(a.astype(jnp.bfloat16), w_ref[...],
                preferred_element_type=jnp.float32)
    y_ref[...] = y.astype(y_ref.dtype)
    stats_ref[...] = _pack_stats(y)


def _bn_relu_conv3x3_stats_kernel(x_ref, scale_ref, shift_ref, w_ref,
                                  y_ref, stats_ref, *, H, W, TILE_H):
    # x_ref: whole zero-padded image (H+2, W+2, cin), resident across the
    # chunk axis (index_map ignores it).  Each step computes TILE_H scanlines.
    cin = x_ref.shape[-1]
    j = pl.program_id(1)
    start = pl.multiple_of(j * TILE_H, TILE_H)

    # Haloed window of padded scanlines [start, start + TILE_H + 2).
    window = x_ref[pl.ds(start, TILE_H + 2), :, :].astype(jnp.float32)

    # BN1 apply + ReLU fused into the conv input read; zero the geometric
    # padding border with ONE iota-based select (no HBM mask stream).
    a = window * scale_ref[...] + shift_ref[...]
    hh = lax.broadcasted_iota(jnp.int32, (TILE_H + 2, W + 2, cin), 0) + start
    ww = lax.broadcasted_iota(jnp.int32, (TILE_H + 2, W + 2, cin), 1)
    valid = (hh >= 1) & (hh <= H) & (ww >= 1) & (ww <= W)
    a = jnp.where(valid, jnp.maximum(a, 0.0), 0.0).astype(jnp.bfloat16)

    # im2col: 9 shifted windows concatenated along K -> one MXU matmul
    # against weights pre-reshaped to (9*cin, cout) in the wrapper.
    taps = []
    for kh in range(3):
        for kw in range(3):
            t = a[kh:kh + TILE_H, kw:kw + W, :]
            taps.append(t.reshape(TILE_H * W, cin))
    patch = jnp.concatenate(taps, axis=-1)                 # (TILE_H*W, 9*cin)
    y = jnp.dot(patch, w_ref[...], preferred_element_type=jnp.float32)

    y_ref[...] = y.astype(y_ref.dtype)
    stats_ref[...] = _pack_stats(y)


def _bn_add_relu_kernel(x_ref, res_ref, scale_ref, shift_ref, o_ref):
    # Fused BN3 apply + residual add + ReLU; residual streamed per tile (f32).
    y = (x_ref[...].astype(jnp.float32) * scale_ref[...] + shift_ref[...]
         + res_ref[...])
    o_ref[...] = jnp.maximum(y, 0.0)


# ----------------------------- pallas wrappers -----------------------------

def conv1x1_stats(x2d, w_bf16, *, tm=None):
    m, cin = x2d.shape
    cout = w_bf16.shape[1]
    tm = _row_tile(m) if tm is None else tm
    assert m % tm == 0, (m, tm)   # TODO(synk): pad / masked last tile for
    nt = m // tm                  # non-divisible row counts.
    y, stats = pl.pallas_call(
        _conv1x1_stats_kernel,
        grid=(nt,),
        in_specs=[pl.BlockSpec((tm, cin), lambda i: (i, 0)),
                  pl.BlockSpec((cin, cout), lambda i: (0, 0))],
        out_specs=[pl.BlockSpec((tm, cout), lambda i: (i, 0)),
                   pl.BlockSpec((None, 2, cout), lambda i: (i, 0, 0))],
        out_shape=[jax.ShapeDtypeStruct((m, cout), jnp.bfloat16),
                   jax.ShapeDtypeStruct((nt, 2, cout), jnp.float32)],
        compiler_params=_compiler_params(1),
    )(x2d, w_bf16)
    return y, stats


def bn_relu_conv1x1_stats(x2d, scale, shift, w_bf16, *, tm=None):
    m, cin = x2d.shape
    cout = w_bf16.shape[1]
    tm = _row_tile(m) if tm is None else tm
    assert m % tm == 0, (m, tm)
    nt = m // tm
    y, stats = pl.pallas_call(
        _bn_relu_conv1x1_stats_kernel,
        grid=(nt,),
        in_specs=[pl.BlockSpec((tm, cin), lambda i: (i, 0)),
                  pl.BlockSpec((1, cin), lambda i: (0, 0)),
                  pl.BlockSpec((1, cin), lambda i: (0, 0)),
                  pl.BlockSpec((cin, cout), lambda i: (0, 0))],
        out_specs=[pl.BlockSpec((tm, cout), lambda i: (i, 0)),
                   pl.BlockSpec((None, 2, cout), lambda i: (i, 0, 0))],
        out_shape=[jax.ShapeDtypeStruct((m, cout), jnp.bfloat16),
                   jax.ShapeDtypeStruct((nt, 2, cout), jnp.float32)],
        compiler_params=_compiler_params(1),
    )(x2d, scale, shift, w_bf16)
    return y, stats


def bn_relu_conv3x3_stats(y1, scale, shift, w2_flat_bf16, n, h, wd):
    # y1: (N*H*W, cin) bf16 raw conv1 output (BN1 apply happens in-kernel).
    m, cin = y1.shape
    cout = w2_flat_bf16.shape[1]
    assert m == n * h * wd, (m, n, h, wd)

    tile_h = _h_tile(n, h)
    n_chunks = h // tile_h
    rows = tile_h * wd

    # Small wrapper-side zero pad gives every chunk a clean haloed window.
    # TODO(synk): replace with in-kernel manual-DMA halo for production scale.
    xpad = jnp.pad(y1.reshape(n, h, wd, cin), ((0, 0), (1, 1), (1, 1), (0, 0)))

    kern = functools.partial(_bn_relu_conv3x3_stats_kernel,
                             H=h, W=wd, TILE_H=tile_h)
    y, stats = pl.pallas_call(
        kern,
        grid=(n, n_chunks),
        in_specs=[pl.BlockSpec((None, h + 2, wd + 2, cin),
                               lambda b, j: (b, 0, 0, 0)),
                  pl.BlockSpec((1, cin), lambda b, j: (0, 0)),
                  pl.BlockSpec((1, cin), lambda b, j: (0, 0)),
                  pl.BlockSpec((9 * cin, cout), lambda b, j: (0, 0))],
        out_specs=[pl.BlockSpec((rows, cout),
                                lambda b, j: (b * n_chunks + j, 0)),
                   pl.BlockSpec((None, 2, cout),
                                lambda b, j: (b * n_chunks + j, 0, 0))],
        out_shape=[jax.ShapeDtypeStruct((m, cout), jnp.bfloat16),
                   jax.ShapeDtypeStruct((n * n_chunks, 2, cout), jnp.float32)],
        compiler_params=_compiler_params(2),
    )(xpad, scale, shift, w2_flat_bf16)
    return y, stats


def bn_add_relu(y, residual, scale, shift, *, tm=None):
    m, c = y.shape
    tm = _row_tile(m) if tm is None else tm
    assert m % tm == 0, (m, tm)
    nt = m // tm
    return pl.pallas_call(
        _bn_add_relu_kernel,
        grid=(nt,),
        in_specs=[pl.BlockSpec((tm, c), lambda i: (i, 0)),
                  pl.BlockSpec((tm, c), lambda i: (i, 0)),
                  pl.BlockSpec((1, c), lambda i: (0, 0)),
                  pl.BlockSpec((1, c), lambda i: (0, 0))],
        out_specs=pl.BlockSpec((tm, c), lambda i: (i, 0)),
        out_shape=jax.ShapeDtypeStruct((m, c), jnp.float32),
        compiler_params=_compiler_params(1),
    )(y, residual, scale, shift)


def _bn_scale_shift(stats, count, gamma, beta):
    # Fold per-tile partials into train-mode BN scale/shift (tiny JAX glue).
    # TODO(synk): for very large N*H*W switch to a Welford-style combine to
    # avoid E[y^2]-mean^2 cancellation.
    total = jnp.sum(stats[:, 0, :], axis=0)
    total_sq = jnp.sum(stats[:, 1, :], axis=0)
    mean = total / count
    var = jnp.maximum(total_sq / count - mean * mean, 0.0)   # biased variance
    inv_std = lax.rsqrt(var + EPS)
    scale = gamma.reshape(-1) * inv_std
    shift = beta.reshape(-1) - mean * scale
    return scale.reshape(1, -1), shift.reshape(1, -1)


# ------------------------------- forward pass ------------------------------

def bottleneck_forward(x_nchw, params):
    # TODO(synk): downsample branch and stride>1 not implemented (module is
    # constructed with downsample=None, stride=1).
    n, cin, h, wd = x_nchw.shape
    planes = params["w1"].shape[1]
    cout = params["w3"].shape[1]
    assert cout == cin, "downsample=None requires inplanes == planes*expansion"
    m = n * h * wd
    count = float(m)

    x2d = jnp.transpose(x_nchw, (0, 2, 3, 1)).reshape(m, cin)   # NCHW -> rows

    # Weights pre-cast to bf16 for the MXU; 3x3 weights pre-reshaped for im2col.
    w1b = params["w1"].astype(jnp.bfloat16)
    w2b = params["w2"].reshape(9 * planes, planes).astype(jnp.bfloat16)
    w3b = params["w3"].astype(jnp.bfloat16)

    # stage 1: conv1 (1x1) + BN1 partial stats
    y1, st1 = conv1x1_stats(x2d, w1b)
    sc1, sh1 = _bn_scale_shift(st1, count, params["g1"], params["b1"])

    # stage 2: BN1 apply + ReLU fused, im2col 3x3 conv + BN2 partials
    y2, st2 = bn_relu_conv3x3_stats(y1, sc1, sh1, w2b, n, h, wd)
    sc2, sh2 = _bn_scale_shift(st2, count, params["g2"], params["b2"])

    # stage 3: BN2 apply + ReLU fused, conv3 (1x1) + BN3 partials
    y3, st3 = bn_relu_conv1x1_stats(y2, sc2, sh2, w3b)
    sc3, sh3 = _bn_scale_shift(st3, count, params["g3"], params["b3"])

    # stage 4: BN3 apply + residual add + ReLU (residual streamed per tile)
    out2d = bn_add_relu(y3, x2d, sc3, sh3)
    return jnp.transpose(out2d.reshape(n, h, wd, cout), (0, 3, 1, 2))


# ---------------------------- reference (pure JAX) --------------------------

def bottleneck_reference(x_nchw, params):
    x = jnp.transpose(x_nchw, (0, 2, 3, 1))     # NHWC

    def bn(y, g, b):
        mu = jnp.mean(y, axis=(0, 1, 2), keepdims=True)
        var = jnp.mean((y - mu) ** 2, axis=(0, 1, 2), keepdims=True)
        return (g.reshape(1, 1, 1, -1) * (y - mu) / jnp.sqrt(var + EPS)
                + b.reshape(1, 1, 1, -1))

    o = jax.nn.relu(bn(jnp.einsum("nhwc,cd->nhwd", x, params["w1"]),
                       params["g1"], params["b1"]))
    o = lax.conv_general_dilated(o, params["w2"], (1, 1), "SAME",
                                 dimension_numbers=("NHWC", "HWIO", "NHWC"))
    o = jax.nn.relu(bn(o, params["g2"], params["b2"]))
    o = bn(jnp.einsum("nhwc,cd->nhwd", o, params["w3"]),
           params["g3"], params["b3"])
    o = jax.nn.relu(o + x)
    return jnp.transpose(o, (0, 3, 1, 2))


# ----------------------------------- main -----------------------------------

if __name__ == "__main__":
    planes = 32
    inplanes = planes * EXPANSION     # 128: residual add valid, lane-dense I/O
    n, h, wd = 2, 16, 16

    key = jax.random.PRNGKey(0)
    kx, k1, k2, k3 = jax.random.split(key, 4)

    x = jax.random.normal(kx, (n, inplanes, h, wd), jnp.float32)
    params = {
        # conv weights stored channels-last ([Cin, Cout] / [3,3,Cin,Cout])
        "w1": 0.1 * jax.random.normal(k1, (inplanes, planes), jnp.float32),
        "w2": 0.1 * jax.random.normal(k2, (3, 3, planes, planes), jnp.float32),
        "w3": 0.1 * jax.random.normal(k3, (planes, planes * EXPANSION),
                                      jnp.float32),
        # BatchNorm2d default init: weight=1, bias=0 (train-mode batch stats)
        "g1": jnp.ones((1, planes), jnp.float32),
        "b1": jnp.zeros((1, planes), jnp.float32),
        "g2": jnp.ones((1, planes), jnp.float32),
        "b2": jnp.zeros((1, planes), jnp.float32),
        "g3": jnp.ones((1, planes * EXPANSION), jnp.float32),
        "b3": jnp.zeros((1, planes * EXPANSION), jnp.float32),
    }

    fwd = jax.jit(bottleneck_forward)
    out = jax.block_until_ready(fwd(x, params))
    ref = jax.block_until_ready(bottleneck_reference(x, params))

    assert out.shape == (n, inplanes, h, wd)
    err = float(jnp.max(jnp.abs(out - ref)))
    # Tolerance reflects bf16 inter-stage storage + bf16 MXU inputs (per the
    # perf review); stats, accumulation and the residual path remain f32.
    assert jnp.allclose(out, ref, atol=6e-2, rtol=6e-2), f"mismatch: {err}"

    print("KERNEL_OK")
</pallas_src>

<mosaic_0001>
module attributes {stable_mosaic.version = 11 : i64} {
  func.func @_conv1x1_stats_kernel(%arg0: i32, %arg1: memref<128x128xf32, #tpu.memory_space<vmem>>, %arg2: memref<128x32xbf16, #tpu.memory_space<vmem>>, %arg3: memref<128x32xbf16, #tpu.memory_space<vmem>>, %arg4: memref<1x2x32xf32, #tpu.memory_space<vmem>>) attributes {dimension_semantics = [#tpu.dimension_semantics<parallel>], iteration_bounds = array<i64: 4>, scalar_prefetch = 0 : i64, scratch_operands = 0 : i64, tpu.core_type = #tpu.core_type<tc>, window_params = [{transform_indices = @transform_0, window_bounds = array<i64: 128, 128>}, {pipeline_mode = #tpu.pipeline_mode<synchronous>, transform_indices = @transform_1, window_bounds = array<i64: 128, 32>}, {transform_indices = @transform_2, window_bounds = array<i64: 128, 32>}, {transform_indices = @transform_3, window_bounds = array<i64: 1, 2, 32>}]} {
    %c0 = arith.constant 0 : index
    %c0_0 = arith.constant 0 : index
    %0 = vector.load %arg1[%c0, %c0_0] : memref<128x128xf32, #tpu.memory_space<vmem>>, vector<128x128xf32>
    %1 = arith.truncf %0 : vector<128x128xf32> to vector<128x128xbf16>
    %c0_1 = arith.constant 0 : index
    %c0_2 = arith.constant 0 : index
    %2 = vector.load %arg2[%c0_1, %c0_2] : memref<128x32xbf16, #tpu.memory_space<vmem>>, vector<128x32xbf16>
    %cst = arith.constant dense<0.000000e+00> : vector<128x32xf32>
    %3 = tpu.matmul %1, %2, %cst {dimension_numbers = #tpu.dot_dimension_numbers<[1], [0], [0], [1], [0, 0, 1, 1], [], []>} : vector<128x128xbf16>, vector<128x32xbf16>, vector<128x32xf32> -> vector<128x32xf32>
    %4 = arith.truncf %3 : vector<128x32xf32> to vector<128x32xbf16>
    %c0_3 = arith.constant 0 : index
    %c0_4 = arith.constant 0 : index
    %5 = vector.load %arg3[%c0_3, %c0_4] : memref<128x32xbf16, #tpu.memory_space<vmem>>, vector<128x32xbf16>
    tpu.vector_store %arg3[%c0_3, %c0_4], %4 {strides = array<i32>} : memref<128x32xbf16, #tpu.memory_space<vmem>>, vector<128x32xbf16>,
    %cst_5 = arith.constant dense<0.000000e+00> : vector<32xf32>
    %6 = vector.multi_reduction <add>, %3, %cst_5 [0] : vector<128x32xf32> to vector<32xf32>
    %7 = vector.shape_cast %6 : vector<32xf32> to vector<1x32xf32>
    %8 = arith.mulf %3, %3 : vector<128x32xf32>
    %cst_6 = arith.constant dense<0.000000e+00> : vector<32xf32>
    %9 = vector.multi_reduction <add>, %8, %cst_6 [0] : vector<128x32xf32> to vector<32xf32>
    %10 = vector.shape_cast %9 : vector<32xf32> to vector<1x32xf32>
    %11 = tpu.iota {dimensions = array<i32: 0>} : vector<2x32xi32>
    %c0_i32 = arith.constant 0 : i32
    %12 = vector.broadcast %c0_i32 : i32 to vector<2x32xi32>
    %13 = arith.cmpi eq, %11, %12 : vector<2x32xi32>
    %14 = vector.shape_cast %7 : vector<1x32xf32> to vector<1x32xf32>
    %15 = vector.broadcast %14 : vector<1x32xf32> to vector<2x32xf32>
    %16 = vector.shape_cast %10 : vector<1x32xf32> to vector<1x32xf32>
    %17 = vector.broadcast %16 : vector<1x32xf32> to vector<2x32xf32>
    %18 = arith.select %13, %15, %17 : vector<2x32xi1>, vector<2x32xf32>
    %c0_7 = arith.constant 0 : index
    %c0_8 = arith.constant 0 : index
    %c0_9 = arith.constant 0 : index
    %19 = vector.load %arg4[%c0_7, %c0_8, %c0_9] : memref<1x2x32xf32, #tpu.memory_space<vmem>>, vector<1x2x32xf32>
    %20 = vector.shape_cast %19 : vector<1x2x32xf32> to vector<2x32xf32>
    %21 = vector.shape_cast %18 : vector<2x32xf32> to vector<1x2x32xf32>
    tpu.vector_store %arg4[%c0_7, %c0_8, %c0_9], %21 {strides = array<i32>} : memref<1x2x32xf32, #tpu.memory_space<vmem>>, vector<1x2x32xf32>,
    return
  }
  func.func @transform_0(%arg0: i32) -> (i32, i32) {
    %c0_i32 = arith.constant 0 : i32
    %c0_i32_0 = arith.constant 0 : i32
    return %arg0, %c0_i32 : i32, i32
  }
  func.func @transform_1(%arg0: i32) -> (i32, i32) {
    %c0_i32 = arith.constant 0 : i32
    %c0_i32_0 = arith.constant 0 : i32
    %c0_i32_1 = arith.constant 0 : i32
    return %c0_i32, %c0_i32_0 : i32, i32
  }
  func.func @transform_2(%arg0: i32) -> (i32, i32) {
    %c0_i32 = arith.constant 0 : i32
    %c0_i32_0 = arith.constant 0 : i32
    return %arg0, %c0_i32 : i32, i32
  }
  func.func @transform_3(%arg0: i32) -> (i32, i32, i32) {
    %c0_i32 = arith.constant 0 : i32
    %c0_i32_0 = arith.constant 0 : i32
    %c0_i32_1 = arith.constant 0 : i32
    return %arg0, %c0_i32, %c0_i32_0 : i32, i32, i32
  }
}

module attributes {stable_mosaic.version = 11 : i64} {
  func.func @_bn_relu_conv3x3_stats_kernel(%arg0: i32, %arg1: i32, %arg2: memref<1x18x18x32xbf16, #tpu.memory_space<vmem>>, %arg3: memref<1x32xf32, #tpu.memory_space<vmem>>, %arg4: memref<1x32xf32, #tpu.memory_space<vmem>>, %arg5: memref<288x32xbf16, #tpu.memory_space<vmem>>, %arg6: memref<64x32xbf16, #tpu.memory_space<vmem>>, %arg7: memref<1x2x32xf32, #tpu.memory_space<vmem>>) attributes {dimension_semantics = [#tpu.dimension_semantics<parallel>, #tpu.dimension_semantics<parallel>], iteration_bounds = array<i64: 2, 4>, scalar_prefetch = 0 : i64, scratch_operands = 0 : i64, tpu.core_type = #tpu.core_type<tc>, window_params = [{transform_indices = @transform_0, window_bounds = array<i64: 1, 18, 18, 32>}, {pipeline_mode = #tpu.pipeline_mode<synchronous>, transform_indices = @transform_1, window_bounds = array<i64: 1, 32>}, {pipeline_mode = #tpu.pipeline_mode<synchronous>, transform_indices = @transform_2, window_bounds = array<i64: 1, 32>}, {pipeline_mode = #tpu.pipeline_mode<synchronous>, transform_indices = @transform_3, window_bounds = array<i64: 288, 32>}, {transform_indices = @transform_4, window_bounds = array<i64: 64, 32>}, {transform_indices = @transform_5, window_bounds = array<i64: 1, 2, 32>}]} {
    %c4_i32 = arith.constant 4 : i32
    %0 = arith.muli %arg1, %c4_i32 : i32
    %1 = tpu.assume_multiple %0, 4 : i32
    %c0 = arith.constant 0 : index
    %2 = arith.index_cast %1 : i32 to index
    %c0_0 = arith.constant 0 : index
    %c0_1 = arith.constant 0 : index
    %3 = vector.load %arg2[%c0, %2, %c0_0, %c0_1] : memref<1x18x18x32xbf16, #tpu.memory_space<vmem>>, vector<1x6x18x32xbf16>
    %4 = vector.shape_cast %3 : vector<1x6x18x32xbf16> to vector<6x18x32xbf16>
    %5 = arith.extf %4 : vector<6x18x32xbf16> to vector<6x18x32xf32>
    %c0_2 = arith.constant 0 : index
    %c0_3 = arith.constant 0 : index
    %6 = vector.load %arg3[%c0_2, %c0_3] : memref<1x32xf32, #tpu.memory_space<vmem>>, vector<1x32xf32>
    %7 = vector.shape_cast %6 : vector<1x32xf32> to vector<1x1x32xf32>
    %8 = vector.broadcast %7 : vector<1x1x32xf32> to vector<6x18x32xf32>
    %9 = arith.mulf %5, %8 : vector<6x18x32xf32>
    %c0_4 = arith.constant 0 : index
    %c0_5 = arith.constant 0 : index
    %10 = vector.load %arg4[%c0_4, %c0_5] : memref<1x32xf32, #tpu.memory_space<vmem>>, vector<1x32xf32>
    %11 = vector.shape_cast %10 : vector<1x32xf32> to vector<1x1x32xf32>
    %12 = vector.broadcast %11 : vector<1x1x32xf32> to vector<6x18x32xf32>
    %13 = arith.addf %9, %12 : vector<6x18x32xf32>
    %14 = tpu.iota {dimensions = array<i32: 0>} : vector<6x18x32xi32>
    %15 = vector.broadcast %1 : i32 to vector<6x18x32xi32>
    %16 = arith.addi %14, %15 : vector<6x18x32xi32>
    %17 = tpu.iota {dimensions = array<i32: 1>} : vector<6x18x32xi32>
    %c1_i32 = arith.constant 1 : i32
    %18 = vector.broadcast %c1_i32 : i32 to vector<6x18x32xi32>
    %19 = arith.cmpi sge, %16, %18 : vector<6x18x32xi32>
    %c16_i32 = arith.constant 16 : i32
    %20 = vector.broadcast %c16_i32 : i32 to vector<6x18x32xi32>
    %21 = arith.cmpi sle, %16, %20 : vector<6x18x32xi32>
    %22 = arith.andi %19, %21 : vector<6x18x32xi1>
    %c1_i32_6 = arith.constant 1 : i32
    %23 = vector.broadcast %c1_i32_6 : i32 to vector<6x18x32xi32>
    %24 = arith.cmpi sge, %17, %23 : vector<6x18x32xi32>
    %25 = arith.andi %22, %24 : vector<6x18x32xi1>
    %c16_i32_7 = arith.constant 16 : i32
    %26 = vector.broadcast %c16_i32_7 : i32 to vector<6x18x32xi32>
    %27 = arith.cmpi sle, %17, %26 : vector<6x18x32xi32>
    %28 = arith.andi %25, %27 : vector<6x18x32xi1>
    %cst = arith.constant 0.000000e+00 : f32
    %29 = vector.broadcast %cst : f32 to vector<6x18x32xf32>
    %30 = arith.maximumf %13, %29 : vector<6x18x32xf32>
    %cst_8 = arith.constant 0.000000e+00 : f32
    %31 = vector.broadcast %cst_8 : f32 to vector<6x18x32xf32>
    %32 = arith.select %28, %30, %31 : vector<6x18x32xi1>, vector<6x18x32xf32>
    %33 = arith.truncf %32 : vector<6x18x32xf32> to vector<6x18x32xbf16>
    %34 = vector.extract_strided_slice %33 {offsets = [0, 0, 0], sizes = [4, 16, 32], strides = [1, 1, 1]} : vector<6x18x32xbf16> to vector<4x16x32xbf16>
    %35 = vector.shape_cast %34 : vector<4x16x32xbf16> to vector<64x32xbf16>
    %36 = vector.extract_strided_slice %33 {offsets = [0, 1, 0], sizes = [4, 16, 32], strides = [1, 1, 1]} : vector<6x18x32xbf16> to vector<4x16x32xbf16>
    %37 = vector.shape_cast %36 : vector<4x16x32xbf16> to vector<64x32xbf16>
    %38 = vector.extract_strided_slice %33 {offsets = [0, 2, 0], sizes = [4, 16, 32], strides = [1, 1, 1]} : vector<6x18x32xbf16> to vector<4x16x32xbf16>
    %39 = vector.shape_cast %38 : vector<4x16x32xbf16> to vector<64x32xbf16>
    %40 = vector.extract_strided_slice %33 {offsets = [1, 0, 0], sizes = [4, 16, 32], strides = [1, 1, 1]} : vector<6x18x32xbf16> to vector<4x16x32xbf16>
    %41 = vector.shape_cast %40 : vector<4x16x32xbf16> to vector<64x32xbf16>
    %42 = vector.extract_strided_slice %33 {offsets = [1, 1, 0], sizes = [4, 16, 32], strides = [1, 1, 1]} : vector<6x18x32xbf16> to vector<4x16x32xbf16>
    %43 = vector.shape_cast %42 : vector<4x16x32xbf16> to vector<64x32xbf16>
    %44 = vector.extract_strided_slice %33 {offsets = [1, 2, 0], sizes = [4, 16, 32], strides = [1, 1, 1]} : vector<6x18x32xbf16> to vector<4x16x32xbf16>
    %45 = vector.shape_cast %44 : vector<4x16x32xbf16> to vector<64x32xbf16>
    %46 = vector.extract_strided_slice %33 {offsets = [2, 0, 0], sizes = [4, 16, 32], strides = [1, 1, 1]} : vector<6x18x32xbf16> to vector<4x16x32xbf16>
    %47 = vector.shape_cast %46 : vector<4x16x32xbf16> to vector<64x32xbf16>
    %48 = vector.extract_strided_slice %33 {offsets = [2, 1, 0], sizes = [4, 16, 32], strides = [1, 1, 1]} : vector<6x18x32xbf16> to vector<4x16x32xbf16>
    %49 = vector.shape_cast %48 : vector<4x16x32xbf16> to vector<64x32xbf16>
    %50 = vector.extract_strided_slice %33 {offsets = [2, 2, 0], sizes = [4, 16, 32], strides = [1, 1, 1]} : vector<6x18x32xbf16> to vector<4x16x32xbf16>
    %51 = vector.shape_cast %50 : vector<4x16x32xbf16> to vector<64x32xbf16>
    %52 = tpu.concatenate %35, %37, %39, %41, %43, %45, %47, %49, %51 in 1 : vector<64x32xbf16>, vector<64x32xbf16>, vector<64x32xbf16>, vector<64x32xbf16>, vector<64x32xbf16>, vector<64x32xbf16>, vector<64x32xbf16>, vector<64x32xbf16>, vector<64x32xbf16> -> vector<64x288xbf16>
    %c0_9 = arith.constant 0 : index
    %c0_10 = arith.constant 0 : index
    %53 = vector.load %arg5[%c0_9, %c0_10] : memref<288x32xbf16, #tpu.memory_space<vmem>>, vector<288x32xbf16>
    %cst_11 = arith.constant dense<0.000000e+00> : vector<64x32xf32>
    %54 = tpu.matmul %52, %53, %cst_11 {dimension_numbers = #tpu.dot_dimension_numbers<[1], [0], [0], [1], [0, 0, 1, 1], [], []>} : vector<64x288xbf16>, vector<288x32xbf16>, vector<64x32xf32> -> vector<64x32xf32>
    %55 = arith.truncf %54 : vector<64x32xf32> to vector<64x32xbf16>
    %c0_12 = arith.constant 0 : index
    %c0_13 = arith.constant 0 : index
    %56 = vector.load %arg6[%c0_12, %c0_13] : memref<64x32xbf16, #tpu.memory_space<vmem>>, vector<64x32xbf16>
    tpu.vector_store %arg6[%c0_12, %c0_13], %55 {strides = array<i32>} : memref<64x32xbf16, #tpu.memory_space<vmem>>, vector<64x32xbf16>,
    %cst_14 = arith.constant dense<0.000000e+00> : vector<32xf32>
    %57 = vector.multi_reduction <add>, %54, %cst_14 [0] : vector<64x32xf32> to vector<32xf32>
    %58 = vector.shape_cast %57 : vector<32xf32> to vector<1x32xf32>
    %59 = arith.mulf %54, %54 : vector<64x32xf32>
    %cst_15 = arith.constant dense<0.000000e+00> : vector<32xf32>
    %60 = vector.multi_reduction <add>, %59, %cst_15 [0] : vector<64x32xf32> to vector<32xf32>
    %61 = vector.shape_cast %60 : vector<32xf32> to vector<1x32xf32>
    %62 = tpu.iota {dimensions = array<i32: 0>} : vector<2x32xi32>
    %c0_i32 = arith.constant 0 : i32
    %63 = vector.broadcast %c0_i32 : i32 to vector<2x32xi32>
    %64 = arith.cmpi eq, %62, %63 : vector<2x32xi32>
    %65 = vector.shape_cast %58 : vector<1x32xf32> to vector<1x32xf32>
    %66 = vector.broadcast %65 : vector<1x32xf32> to vector<2x32xf32>
    %67 = vector.shape_cast %61 : vector<1x32xf32> to vector<1x32xf32>
    %68 = vector.broadcast %67 : vector<1x32xf32> to vector<2x32xf32>
    %69 = arith.select %64, %66, %68 : vector<2x32xi1>, vector<2x32xf32>
    %c0_16 = arith.constant 0 : index
    %c0_17 = arith.constant 0 : index
    %c0_18 = arith.constant 0 : index
    %70 = vector.load %arg7[%c0_16, %c0_17, %c0_18] : memref<1x2x32xf32, #tpu.memory_space<vmem>>, vector<1x2x32xf32>
    %71 = vector.shape_cast %70 : vector<1x2x32xf32> to vector<2x32xf32>
    %72 = vector.shape_cast %69 : vector<2x32xf32> to vector<1x2x32xf32>
    tpu.vector_store %arg7[%c0_16, %c0_17, %c0_18], %72 {strides = array<i32>} : memref<1x2x32xf32, #tpu.memory_space<vmem>>, vector<1x2x32xf32>,
    return
  }
  func.func @transform_0(%arg0: i32, %arg1: i32) -> (i32, i32, i32, i32) {
    %c0_i32 = arith.constant 0 : i32
    %c0_i32_0 = arith.constant 0 : i32
    %c0_i32_1 = arith.constant 0 : i32
    %c0_i32_2 = arith.constant 0 : i32
    return %arg0, %c0_i32, %c0_i32_0, %c0_i32_1 : i32, i32, i32, i32
  }
  func.func @transform_1(%arg0: i32, %arg1: i32) -> (i32, i32) {
    %c0_i32 = arith.constant 0 : i32
    %c0_i32_0 = arith.constant 0 : i32
    %c0_i32_1 = arith.constant 0 : i32
    return %c0_i32, %c0_i32_0 : i32, i32
  }
  func.func @transform_2(%arg0: i32, %arg1: i32) -> (i32, i32) {
    %c0_i32 = arith.constant 0 : i32
    %c0_i32_0 = arith.constant 0 : i32
    %c0_i32_1 = arith.constant 0 : i32
    return %c0_i32, %c0_i32_0 : i32, i32
  }
  func.func @transform_3(%arg0: i32, %arg1: i32) -> (i32, i32) {
    %c0_i32 = arith.constant 0 : i32
    %c0_i32_0 = arith.constant 0 : i32
    %c0_i32_1 = arith.constant 0 : i32
    return %c0_i32, %c0_i32_0 : i32, i32
  }
  func.func @transform_4(%arg0: i32, %arg1: i32) -> (i32, i32) {
    %c4_i32 = arith.constant 4 : i32
    %0 = arith.muli %arg0, %c4_i32 : i32
    %1 = arith.addi %0, %arg1 : i32
    %c0_i32 = arith.constant 0 : i32
    %c0_i32_0 = arith.constant 0 : i32
    return %1, %c0_i32 : i32, i32
  }
  func.func @transform_5(%arg0: i32, %arg1: i32) -> (i32, i32, i32) {
    %c4_i32 = arith.constant 4 : i32
    %0 = arith.muli %arg0, %c4_i32 : i32
    %1 = arith.addi %0, %arg1 : i32
    %c0_i32 = arith.constant 0 : i32
    %c0_i32_0 = arith.constant 0 : i32
    %c0_i32_1 = arith.constant 0 : i32
    return %1, %c0_i32, %c0_i32_0 : i32, i32, i32
  }
}

module attributes {stable_mosaic.version = 11 : i64} {
  func.func @_bn_relu_conv1x1_stats_kernel(%arg0: i32, %arg1: memref<128x32xbf16, #tpu.memory_space<vmem>>, %arg2: memref<1x32xf32, #tpu.memory_space<vmem>>, %arg3: memref<1x32xf32, #tpu.memory_space<vmem>>, %arg4: memref<32x128xbf16, #tpu.memory_space<vmem>>, %arg5: memref<128x128xbf16, #tpu.memory_space<vmem>>, %arg6: memref<1x2x128xf32, #tpu.memory_space<vmem>>) attributes {dimension_semantics = [#tpu.dimension_semantics<parallel>], iteration_bounds = array<i64: 4>, scalar_prefetch = 0 : i64, scratch_operands = 0 : i64, tpu.core_type = #tpu.core_type<tc>, window_params = [{transform_indices = @transform_0, window_bounds = array<i64: 128, 32>}, {pipeline_mode = #tpu.pipeline_mode<synchronous>, transform_indices = @transform_1, window_bounds = array<i64: 1, 32>}, {pipeline_mode = #tpu.pipeline_mode<synchronous>, transform_indices = @transform_2, window_bounds = array<i64: 1, 32>}, {pipeline_mode = #tpu.pipeline_mode<synchronous>, transform_indices = @transform_3, window_bounds = array<i64: 32, 128>}, {transform_indices = @transform_4, window_bounds = array<i64: 128, 128>}, {transform_indices = @transform_5, window_bounds = array<i64: 1, 2, 128>}]} {
    %c0 = arith.constant 0 : index
    %c0_0 = arith.constant 0 : index
    %0 = vector.load %arg1[%c0, %c0_0] : memref<128x32xbf16, #tpu.memory_space<vmem>>, vector<128x32xbf16>
    %1 = arith.extf %0 : vector<128x32xbf16> to vector<128x32xf32>
    %c0_1 = arith.constant 0 : index
    %c0_2 = arith.constant 0 : index
    %2 = vector.load %arg2[%c0_1, %c0_2] : memref<1x32xf32, #tpu.memory_space<vmem>>, vector<1x32xf32>
    %3 = vector.broadcast %2 : vector<1x32xf32> to vector<128x32xf32>
    %4 = arith.mulf %1, %3 : vector<128x32xf32>
    %c0_3 = arith.constant 0 : index
    %c0_4 = arith.constant 0 : index
    %5 = vector.load %arg3[%c0_3, %c0_4] : memref<1x32xf32, #tpu.memory_space<vmem>>, vector<1x32xf32>
    %6 = vector.broadcast %5 : vector<1x32xf32> to vector<128x32xf32>
    %7 = arith.addf %4, %6 : vector<128x32xf32>
    %cst = arith.constant 0.000000e+00 : f32
    %8 = vector.broadcast %cst : f32 to vector<128x32xf32>
    %9 = arith.maximumf %7, %8 : vector<128x32xf32>
    %10 = arith.truncf %9 : vector<128x32xf32> to vector<128x32xbf16>
    %c0_5 = arith.constant 0 : index
    %c0_6 = arith.constant 0 : index
    %11 = vector.load %arg4[%c0_5, %c0_6] : memref<32x128xbf16, #tpu.memory_space<vmem>>, vector<32x128xbf16>
    %cst_7 = arith.constant dense<0.000000e+00> : vector<128x128xf32>
    %12 = tpu.matmul %10, %11, %cst_7 {dimension_numbers = #tpu.dot_dimension_numbers<[1], [0], [0], [1], [0, 0, 1, 1], [], []>} : vector<128x32xbf16>, vector<32x128xbf16>, vector<128x128xf32> -> vector<128x128xf32>
    %13 = arith.truncf %12 : vector<128x128xf32> to vector<128x128xbf16>
    %c0_8 = arith.constant 0 : index
    %c0_9 = arith.constant 0 : index
    %14 = vector.load %arg5[%c0_8, %c0_9] : memref<128x128xbf16, #tpu.memory_space<vmem>>, vector<128x128xbf16>
    tpu.vector_store %arg5[%c0_8, %c0_9], %13 {strides = array<i32>} : memref<128x128xbf16, #tpu.memory_space<vmem>>, vector<128x128xbf16>,
    %cst_10 = arith.constant dense<0.000000e+00> : vector<128xf32>
    %15 = vector.multi_reduction <add>, %12, %cst_10 [0] : vector<128x128xf32> to vector<128xf32>
    %16 = vector.shape_cast %15 : vector<128xf32> to vector<1x128xf32>
    %17 = arith.mulf %12, %12 : vector<128x128xf32>
    %cst_11 = arith.constant dense<0.000000e+00> : vector<128xf32>
    %18 = vector.multi_reduction <add>, %17, %cst_11 [0] : vector<128x128xf32> to vector<128xf32>
    %19 = vector.shape_cast %18 : vector<128xf32> to vector<1x128xf32>
    %20 = tpu.iota {dimensions = array<i32: 0>} : vector<2x128xi32>
    %c0_i32 = arith.constant 0 : i32
    %21 = vector.broadcast %c0_i32 : i32 to vector<2x128xi32>
    %22 = arith.cmpi eq, %20, %21 : vector<2x128xi32>
    %23 = vector.shape_cast %16 : vector<1x128xf32> to vector<1x128xf32>
    %24 = vector.broadcast %23 : vector<1x128xf32> to vector<2x128xf32>
    %25 = vector.shape_cast %19 : vector<1x128xf32> to vector<1x128xf32>
    %26 = vector.broadcast %25 : vector<1x128xf32> to vector<2x128xf32>
    %27 = arith.select %22, %24, %26 : vector<2x128xi1>, vector<2x128xf32>
    %c0_12 = arith.constant 0 : index
    %c0_13 = arith.constant 0 : index
    %c0_14 = arith.constant 0 : index
    %28 = vector.load %arg6[%c0_12, %c0_13, %c0_14] : memref<1x2x128xf32, #tpu.memory_space<vmem>>, vector<1x2x128xf32>
    %29 = vector.shape_cast %28 : vector<1x2x128xf32> to vector<2x128xf32>
    %30 = vector.shape_cast %27 : vector<2x128xf32> to vector<1x2x128xf32>
    tpu.vector_store %arg6[%c0_12, %c0_13, %c0_14], %30 {strides = array<i32>} : memref<1x2x128xf32, #tpu.memory_space<vmem>>, vector<1x2x128xf32>,
    return
  }
  func.func @transform_0(%arg0: i32) -> (i32, i32) {
    %c0_i32 = arith.constant 0 : i32
    %c0_i32_0 = arith.constant 0 : i32
    return %arg0, %c0_i32 : i32, i32
  }
  func.func @transform_1(%arg0: i32) -> (i32, i32) {
    %c0_i32 = arith.constant 0 : i32
    %c0_i32_0 = arith.constant 0 : i32
    %c0_i32_1 = arith.constant 0 : i32
    return %c0_i32, %c0_i32_0 : i32, i32
  }
  func.func @transform_2(%arg0: i32) -> (i32, i32) {
    %c0_i32 = arith.constant 0 : i32
    %c0_i32_0 = arith.constant 0 : i32
    %c0_i32_1 = arith.constant 0 : i32
    return %c0_i32, %c0_i32_0 : i32, i32
  }
  func.func @transform_3(%arg0: i32) -> (i32, i32) {
    %c0_i32 = arith.constant 0 : i32
    %c0_i32_0 = arith.constant 0 : i32
    %c0_i32_1 = arith.constant 0 : i32
    return %c0_i32, %c0_i32_0 : i32, i32
  }
  func.func @transform_4(%arg0: i32) -> (i32, i32) {
    %c0_i32 = arith.constant 0 : i32
    %c0_i32_0 = arith.constant 0 : i32
    return %arg0, %c0_i32 : i32, i32
  }
  func.func @transform_5(%arg0: i32) -> (i32, i32, i32) {
    %c0_i32 = arith.constant 0 : i32
    %c0_i32_0 = arith.constant 0 : i32
    %c0_i32_1 = arith.constant 0 : i32
    return %arg0, %c0_i32, %c0_i32_0 : i32, i32, i32
  }
}

module attributes {stable_mosaic.version = 11 : i64} {
  func.func @_bn_add_relu_kernel(%arg0: i32, %arg1: memref<128x128xbf16, #tpu.memory_space<vmem>>, %arg2: memref<128x128xf32, #tpu.memory_space<vmem>>, %arg3: memref<1x128xf32, #tpu.memory_space<vmem>>, %arg4: memref<1x128xf32, #tpu.memory_space<vmem>>, %arg5: memref<128x128xf32, #tpu.memory_space<vmem>>) attributes {dimension_semantics = [#tpu.dimension_semantics<parallel>], iteration_bounds = array<i64: 4>, scalar_prefetch = 0 : i64, scratch_operands = 0 : i64, tpu.core_type = #tpu.core_type<tc>, window_params = [{transform_indices = @transform_0, window_bounds = array<i64: 128, 128>}, {transform_indices = @transform_1, window_bounds = array<i64: 128, 128>}, {pipeline_mode = #tpu.pipeline_mode<synchronous>, transform_indices = @transform_2, window_bounds = array<i64: 1, 128>}, {pipeline_mode = #tpu.pipeline_mode<synchronous>, transform_indices = @transform_3, window_bounds = array<i64: 1, 128>}, {transform_indices = @transform_4, window_bounds = array<i64: 128, 128>}]} {
    %c0 = arith.constant 0 : index
    %c0_0 = arith.constant 0 : index
    %0 = vector.load %arg1[%c0, %c0_0] : memref<128x128xbf16, #tpu.memory_space<vmem>>, vector<128x128xbf16>
    %1 = arith.extf %0 : vector<128x128xbf16> to vector<128x128xf32>
    %c0_1 = arith.constant 0 : index
    %c0_2 = arith.constant 0 : index
    %2 = vector.load %arg3[%c0_1, %c0_2] : memref<1x128xf32, #tpu.memory_space<vmem>>, vector<1x128xf32>
    %3 = vector.broadcast %2 : vector<1x128xf32> to vector<128x128xf32>
    %4 = arith.mulf %1, %3 : vector<128x128xf32>
    %c0_3 = arith.constant 0 : index
    %c0_4 = arith.constant 0 : index
    %5 = vector.load %arg4[%c0_3, %c0_4] : memref<1x128xf32, #tpu.memory_space<vmem>>, vector<1x128xf32>
    %6 = vector.broadcast %5 : vector<1x128xf32> to vector<128x128xf32>
    %7 = arith.addf %4, %6 : vector<128x128xf32>
    %c0_5 = arith.constant 0 : index
    %c0_6 = arith.constant 0 : index
    %8 = vector.load %arg2[%c0_5, %c0_6] : memref<128x128xf32, #tpu.memory_space<vmem>>, vector<128x128xf32>
    %9 = arith.addf %7, %8 : vector<128x128xf32>
    %cst = arith.constant 0.000000e+00 : f32
    %10 = vector.broadcast %cst : f32 to vector<128x128xf32>
    %11 = arith.maximumf %9, %10 : vector<128x128xf32>
    %c0_7 = arith.constant 0 : index
    %c0_8 = arith.constant 0 : index
    %12 = vector.load %arg5[%c0_7, %c0_8] : memref<128x128xf32, #tpu.memory_space<vmem>>, vector<128x128xf32>
    tpu.vector_store %arg5[%c0_7, %c0_8], %11 {strides = array<i32>} : memref<128x128xf32, #tpu.memory_space<vmem>>, vector<128x128xf32>,
    return
  }
  func.func @transform_0(%arg0: i32) -> (i32, i32) {
    %c0_i32 = arith.constant 0 : i32
    %c0_i32_0 = arith.constant 0 : i32
    return %arg0, %c0_i32 : i32, i32
  }
  func.func @transform_1(%arg0: i32) -> (i32, i32) {
    %c0_i32 = arith.constant 0 : i32
    %c0_i32_0 = arith.constant 0 : i32
    return %arg0, %c0_i32 : i32, i32
  }
  func.func @transform_2(%arg0: i32) -> (i32, i32) {
    %c0_i32 = arith.constant 0 : i32
    %c0_i32_0 = arith.constant 0 : i32
    %c0_i32_1 = arith.constant 0 : i32
    return %c0_i32, %c0_i32_0 : i32, i32
  }
  func.func @transform_3(%arg0: i32) -> (i32, i32) {
    %c0_i32 = arith.constant 0 : i32
    %c0_i32_0 = arith.constant 0 : i32
    %c0_i32_1 = arith.constant 0 : i32
    return %c0_i32, %c0_i32_0 : i32, i32
  }
  func.func @transform_4(%arg0: i32) -> (i32, i32) {
    %c0_i32 = arith.constant 0 : i32
    %c0_i32_0 = arith.constant 0 : i32
    return %arg0, %c0_i32 : i32, i32
  }
}

</mosaic_0001>

<bundles_post_ra>
// kernel: bottleneck_forward.4
= control target key start
LH: loop header
LB: loop body
LE: loop exit
PB: predicated region body
PF: predicated region fallthrough
CT: control target
= control target key end

     0   :  { %9 = vsyncpa [#allocation3], 0  ;;  %s1185_s0 = inlined_call_operand.hbm [shape: f32[512,128], index: 0, kind: input, shape index: {}]   ;;  %s1186_s1 = inlined_call_operand.vmem [shape: bf16[128,32], index: 1, kind: input, shape index: {}]   ;;  %s1187_s2 = inlined_call_operand.vmem [shape: bf16[512,32], index: 2, kind: output, shape index: {0}]   ;;  %s1188_s3 = inlined_call_operand.vmem [shape: f32[4,2,32], index: 3, kind: output, shape index: {1}]  }
   0x1   :  { %11 = vsyncpa [#allocation3 + $0x1], 0  ;;  %s923_s12 = smov 0   ;;  %s925_s13 = smov 0  }
   0x2   :  { %s927_s14 = smov 0   ;;  %s929_s15 = smov 0  }
   0x3 LB: > { %s942_s16 = sadd.s32 4294967295, %s898_s15   ;;  %s945_s17 = sadd.s32 1, %s898_s15   ;;  %s898_s15 = sphi %s929_s15, %s1195_s15   ;;  %s894_s14 = sphi %s927_s14, %s1194_s14   ;;  %s890_s13 = sphi %s925_s13, %s1193_s13   ;;  %s886_s12 = sphi %s923_s12, %s1192_s12  }
   0x4   : > { %s21_s18 = ssub.s32 %s898_s15, %s945_s17  ;;  %s24_s19 = sadd.s32 1, %s894_s14 }
   0x5   : > { %p22_p0 = scmp.eq.s32.totalorder %s21_s18, 0  ;;  %p31_p1 = scmp.ne.s32.totalorder %s894_s14, %s890_s13 }
   0x6   : > { %p32_p2 = scmp.eq.s32.totalorder %s898_s15, 0  ;;  %p37_p3 = scmp.ne.s32.totalorder %s890_s13, %s886_s12 }
   0x7   : > { %s955_s20 = scalar_select %p22_p0, %s894_s14, %s24_s19  }
   0x8   : > { %p33_p4 = por %p32_p2, %p31_p1  ;;  %p38_p5 = scmp.eq.s32.totalorder %s942_s16, 0 }
   0x9   : > { %p791_p6 = scmp.lt.s32.totalorder %s898_s15, 4  ;;  %s137_s22 = sand.u32 1, %s894_s14  }
   0xa   : > { %p959_p7 = por %p38_p5, %p37_p3  ;;  %s670_s23 = sshll.u32 %s137_s22, 7 }
   0xb   : > { %s704_s24 = sshll.u32 %s898_s15, 11  ;;  %s141_s28 = scalar_lea.vmem [#allocation2], %s670_s23 }
   0xc   : > { %s968_s27 = scalar_lea.hbm %s1185_s0, %s704_s24  ;;  %s148_s29 = sshll.u32 %s141_s28, 4  ;;  %s970_s29 = int_to_ptr.vmem [resolvable:$true] %s148_s29 }
   0xd   : > { %p972_p8 = pnand %p791_p6, %p33_p4  ;;  %s977_s4 = scalar_lea.sflag [#allocation3], %s137_s22 }
   0xe   : > { %s834_s5 = scalar_lea.hbm %s968_s27, 2048  ;;  %s839_s8 = scalar_lea.hbm %s1185_s0, 8192 }
   0xf   : > { %p835_p10 = scmp.ne.s32.totalorder %s968_s27, %s834_s5  ;;  %p836_p11 = pneg %p972_p8 }
  0x10   : > { %p840_p0 = scmp.lt.u32.totalorder %s968_s27, %s1185_s0  ;;  %p841_p1 = scmp.lt.u32.totalorder %s839_s8, %s834_s5 }
  0x11   : > { %p837_p12 = pnand %p836_p11, %p835_p10  ;;  %p843_p3 = scmp.lt.u32.totalorder %s834_s5, %s968_s27 }
  0x12   : > { %p842_p2 = por %p841_p1, %p840_p0 }
  0x13   : > { %p838_p13 = pneg %p837_p12 }
  0x14   : > { %p844_p4 = por %p843_p3, %p842_p2 }
  0x16   : > { %p845_p5 = pnand %p844_p4, %p838_p13 }
  0x18   : > { %848 = shalt.err (!%p845_p5)
}
  0x19   : > { %s849_s11 = scalar_lea.vmem %s970_s29, 2048  ;;  %s900_s12 = smov [#allocation2]  }
  0x1a   : > { %p850_p6 = scmp.ne.s32.totalorder %s970_s29, %s849_s11  ;;  %s854_s18 = sshll.u32 %s900_s12, 4  ;;  %s855_s18 = int_to_ptr.vmem [resolvable:$false] %s854_s18 }
  0x1b   : > { %s856_s19 = scalar_lea.vmem %s855_s18, 4096  ;;  %p857_p9 = scmp.lt.s32.totalorder %s970_s29, %s855_s18 }
  0x1c   : > { %p852_p10 = pnand %p850_p6, %p836_p11  ;;  %p858_p0 = scmp.lt.s32.totalorder %s856_s19, %s849_s11 }
  0x1e   : > { %p853_p12 = pneg %p852_p10  ;;  %p859_p1 = por %p858_p0, %p857_p9 }
  0x20   : > { %p860_p2 = pnand %p859_p1, %p853_p12 }
  0x22   : > { %863 = shalt.err (!%p860_p2)
}
  0x23   : > { %s901_s22 = smov 128   ;;  %s902_s23 = smov 8  }
  0x24   : > { %790 = dma.hbm_to_vmem [thread:$0]  (!%p972_p8), %s968_s27, 2048, %s970_s29, %s977_s4, %s901_s22, %s901_s22, %s902_s23  }
  0x25   : > { %p156_p11 = scmp.lt.s32.totalorder %s898_s15, 5  ;;  %p1191_p13 = scmp.ge.s32.totalorder %s898_s15, 1 }
  0x27   : > { %p157_p3 = pnand %p1191_p13, %p156_p11 }
  0x28   : > { %s162_s24 = sand.u32 (!%p157_p3), 1, %s890_s13  }
  0x29   : > { %160 = sbr.rel (%p157_p3) target bundleno = 344 (0x158), region = 28  ;;  %s674_s25 = sshll.u32 (!%p157_p3), %s162_s24, 7 }
  0x2a   : > { %s163_s26 = scalar_lea.sflag (!%p157_p3), [#allocation3], %s162_s24  ;;  %s1009_s28 = scalar_lea.vmem (!%p157_p3), [#allocation2], %s674_s25 }
  0x30   : > { %881 = dma.done.wait (%p959_p7), %s163_s26, 2048  }
  0x31   : > { %883 = vsyncadd (%p959_p7), %s163_s26, 4294965248  ;;  %v826_v0 = vld [vmem:[%s1186_s1] sm:$0xff]   ;;  %v827_v1 = vld [vmem:[%s1186_s1 + $0x8] sm:$0xff]   ;;  %s675_s22 = sshll.u32 %s942_s16, 4  ;;  %vm454_vm0 = vcmask 257024   ;;  %vm471_vm1 = vcmask 261120  }
  0x32   : > { %737 = vmatprep.subr.bf16.mxu0 %v826_v0  ;;  %769 = vmatprep.subr.bf16.mxu1 %v826_v0  ;;  %v828_v2 = vld [vmem:[%s1186_s1 + $0x10] sm:$0xff]   ;;  %v829_v3 = vld [vmem:[%s1186_s1 + $0x18] sm:$0xff]   ;;  %v205_v4 = vld [vmem:[%s1009_s28] sm:$0xff]  ;;  %p195_p7 = scmp.lt.s32.totalorder %s675_s22, 63  ;;  %p200_p8 = scmp.lt.s32.totalorder %s942_s16, 3  ;;  %vm566_vm3 = vcmask 254976  }
  0x33   : > { %738 = vmatpush3.bf16.msra.mxu0 %v826_v0  ;;  %777 = vmatpush3.bf16.msra.mxu1 %v826_v0  ;;  %v206_v5 = vld [vmem:[%s1009_s28 + $0x8] sm:$0xff]  ;;  %v213_v7 = vld [vmem:[%s1009_s28 + $0x40] sm:$0xff]  ;;  %v832_v12 = vld [vmem:[%s1186_s1 + $0x30] sm:$0xff]  }
  0x34   : > { %739 = vmatprep.subr.bf16.mxu0 %v827_v1  ;;  %770 = vmatprep.subr.bf16.mxu1 %v827_v1  ;;  %v221_v6 = vpack.c.bf16 %v206_v5, %v205_v4  ;;  %v214_v8 = vld [vmem:[%s1009_s28 + $0x48] sm:$0xff]  ;;  %v830_v9 = vld [vmem:[%s1186_s1 + $0x20] sm:$0xff]   ;;  %v833_v13 = vld [vmem:[%s1186_s1 + $0x38] sm:$0xff]   ;;  %s1197_s22 = smov (!%p195_p7, %s675_s22), 63  ;;  %s1199_s16 = smov (!%p200_p8, %s942_s16), 3 }
  0x35   : > { %v225_v10 = vpack.c.bf16 %v214_v8, %v213_v7  ;;  %v831_v11 = vld [vmem:[%s1186_s1 + $0x28] sm:$0xff]   ;;  %v207_v14 = vld [vmem:[%s1009_s28 + $0x10] sm:$0xff]  ;;  %v208_v15 = vld [vmem:[%s1009_s28 + $0x18] sm:$0xff]  ;;  %s676_s23 = sshll.u32 %s1197_s22, 2 }
  0x36   : > { %753 = vmatprep.mubr.bf16.mxu0 %v221_v6  ;;  %v209_v16 = vld [vmem:[%s1009_s28 + $0x20] sm:$0xff]  ;;  %v215_v17 = vld [vmem:[%s1009_s28 + $0x50] sm:$0xff]  ;;  %v216_v18 = vld [vmem:[%s1009_s28 + $0x58] sm:$0xff]  ;;  %v222_v22 = vpack.c.bf16 %v208_v15, %v207_v14  ;;  %s1059_s26 = scalar_lea.vmem %s1187_s2, %s676_s23 }
  0x37   : > { %740 = vmatpush3.bf16.msra.mxu0 %v827_v1  ;;  %778 = vmatpush3.bf16.msra.mxu1 %v827_v1  ;;  %v210_v19 = vld [vmem:[%s1009_s28 + $0x28] sm:$0xff]  ;;  %v217_v20 = vld [vmem:[%s1009_s28 + $0x60] sm:$0xff]  ;;  %v226_v23 = vpack.c.bf16 %v216_v18, %v215_v17  ;;  %v211_v26 = vld [vmem:[%s1009_s28 + $0x30] sm:$0xff] }
  0x38   : > { %741 = vmatprep.subr.bf16.mxu0 %v828_v2  ;;  %771 = vmatprep.subr.bf16.mxu1 %v828_v2  ;;  %v218_v21 = vld [vmem:[%s1009_s28 + $0x68] sm:$0xff]  ;;  %v223_v24 = vpack.c.bf16 %v210_v19, %v209_v16  ;;  %v212_v27 = vld [vmem:[%s1009_s28 + $0x38] sm:$0xff]  ;;  %v219_v28 = vld [vmem:[%s1009_s28 + $0x70] sm:$0xff] }
  0x39   : > { %761 = vmatprep.mubr.bf16.mxu1 %v225_v10  ;;  %v227_v25 = vpack.c.bf16 %v218_v21, %v217_v20  ;;  %v220_v29 = vld [vmem:[%s1009_s28 + $0x78] sm:$0xff]  ;;  %v224_v30 = vpack.c.bf16 %v212_v27, %v211_v26  ;;  %s677_s28 = sshll.u32 %s1199_s16, 1 }
  0x3a   : > { %v228_v31 = vpack.c.bf16 %v220_v29, %v219_v28  ;;  %s203_s15 = scalar_lea.vmem %s1188_s3, %s677_s28 }
  0x3b   : > { %742 = vmatpush3.bf16.msra.mxu0 %v828_v2  ;;  %779 = vmatpush3.bf16.msra.mxu1 %v828_v2 }
  0x3c   : > { %743 = vmatprep.subr.bf16.mxu0 %v829_v3  ;;  %772 = vmatprep.subr.bf16.mxu1 %v829_v3 }
  0x3f   : > { %744 = vmatpush3.bf16.msra.mxu0 %v829_v3  ;;  %780 = vmatpush3.bf16.msra.mxu1 %v829_v3 }
  0x40   : > { %745 = vmatprep.subr.bf16.mxu0 %v830_v9  ;;  %773 = vmatprep.subr.bf16.mxu1 %v830_v9 }
  0x43   : > { %746 = vmatpush3.bf16.msra.mxu0 %v830_v9  ;;  %781 = vmatpush3.bf16.msra.mxu1 %v830_v9 }
  0x44   : > { %747 = vmatprep.subr.bf16.mxu0 %v831_v11  ;;  %774 = vmatprep.subr.bf16.mxu1 %v831_v11 }
  0x47   : > { %748 = vmatpush3.bf16.msra.mxu0 %v831_v11  ;;  %782 = vmatpush3.bf16.msra.mxu1 %v831_v11 }
  0x48   : > { %749 = vmatprep.subr.bf16.mxu0 %v832_v12  ;;  %775 = vmatprep.subr.bf16.mxu1 %v832_v12 }
  0x4b   : > { %750 = vmatpush3.bf16.msra.mxu0 %v832_v12  ;;  %783 = vmatpush3.bf16.msra.mxu1 %v832_v12 }
  0x4c   : > { %751 = vmatprep.subr.bf16.mxu0 %v833_v13  ;;  %776 = vmatprep.subr.bf16.mxu1 %v833_v13 }
  0x4f   : > { %752 = vmatpush3.bf16.msra.mxu0 %v833_v13  ;;  %784 = vmatpush3.bf16.msra.mxu1 %v833_v13 }
  0x52   : > { %754 = vmatmul.mubr.bf16.vlgmr.msra.gmra.mrb[0].mxu0 %v222_v22  ;;  %762 = vmatmul.mubr.bf16.vlgmr.msra.gmra.mrb[0].mxu1 %v226_v23 }
  0x53   : > { %757 = vmatprep.mubr.bf16.mxu0 %v223_v24  ;;  %765 = vmatprep.mubr.bf16.mxu1 %v227_v25 }
  0x5a   : > { %758 = vmatmul.mubr.bf16.gmra.mrb[4].mxu0 %v224_v30  ;;  %766 = vmatmul.mubr.bf16.gmra.mrb[4].mxu1 %v228_v31 }
 0x125   : > { %v755_v32 = vpop.f32.mrb[0].mxu0  ;;  %v1061_v33 = vpop.f32.mrb[0].mxu1 }
 0x126   : > { %v707_v34 = vpack.c.bf16 %v755_v32, %v755_v32  ;;  %v327_v35 = vpop.f32.mrb[1].mxu0  ;;  %v715_v36 = vpack.c.bf16 %v1061_v33, %v1061_v33  ;;  %v1065_v37 = vpop.f32.mrb[1].mxu1  ;;  %v511_v42 = vmul.f32 %v755_v32, %v755_v32  ;;  %v475_v53 = vsel %vm471_vm1, %v755_v32, 0.0 }
 0x127   : > { %v705_v38 = vpack.c.bf16 %v327_v35, %v327_v35  ;;  %v509_v39 = vmul.f32 %v327_v35, %v327_v35  ;;  %v756_v40 = vpop.f32.mrb[2].mxu0  ;;  %v1067_v41 = vpop.f32.mrb[2].mxu1  ;;  %v472_v46 = vsel %vm471_vm1, %v327_v35, 0.0  ;;  %v713_v52 = vpack.c.bf16 %v1065_v37, %v1065_v37 }
 0x128   : > { %457 = vst.msk [vmem:[%s1059_s26 + $0x8] sm:$0xf] %vm454_vm0, %v707_v34  ;;  %v708_v43 = vpack.c.bf16 %v756_v40, %v756_v40  ;;  %v330_v44 = vpop.f32.mrb[3].mxu0  ;;  %465 = vst.msk [vmem:[%s1059_s26 + $0x28] sm:$0xf] %vm454_vm0, %v715_v36  ;;  %v1073_v45 = vpop.f32.mrb[3].mxu1  ;;  %v512_v50 = vmul.f32 %v756_v40, %v756_v40  ;;  %v716_v56 = vpack.c.bf16 %v1067_v41, %v1067_v41 }
 0x129   : > { %455 = vst.msk [vmem:[%s1059_s26] sm:$0xf] %vm454_vm0, %v705_v38  ;;  %v706_v47 = vpack.c.bf16 %v330_v44, %v330_v44  ;;  %v473_v48 = vsel %vm471_vm1, %v330_v44, 0.0  ;;  %v510_v49 = vmul.f32 %v330_v44, %v330_v44  ;;  %v525_v54 = vsel %vm471_vm1, %v509_v39, 0.0  ;;  %463 = vst.msk [vmem:[%s1059_s26 + $0x20] sm:$0xf] %vm454_vm0, %v713_v52 }
 0x12a   : > { %458 = vst.msk [vmem:[%s1059_s26 + $0xc] sm:$0xf] %vm454_vm0, %v708_v43  ;;  %v474_v51 = vadd.f32 %v473_v48, %v472_v46  ;;  %v528_v59 = vsel %vm471_vm1, %v511_v42, 0.0  ;;  %466 = vst.msk [vmem:[%s1059_s26 + $0x2c] sm:$0xf] %vm454_vm0, %v716_v56  ;;  %v714_v61 = vpack.c.bf16 %v1073_v45, %v1073_v45  ;;  %v477_v63 = vsel %vm471_vm1, %v756_v40, 0.0 }
 0x12b   : > { %456 = vst.msk [vmem:[%s1059_s26 + $0x4] sm:$0xf] %vm454_vm0, %v706_v47  ;;  %v526_v55 = vsel %vm471_vm1, %v510_v49, 0.0  ;;  %v530_v0 = vsel %vm471_vm1, %v512_v50, 0.0  ;;  %v517_v23 = vmul.f32 %v1065_v37, %v1065_v37  ;;  %v487_v34 = vsel %vm471_vm1, %v1065_v37, 0.0 }
 0x12c   : > { %v476_v57 = vadd.f32 %v475_v53, %v474_v51  ;;  %v527_v58 = vadd.f32 %v526_v55, %v525_v54  ;;  %464 = vst.msk [vmem:[%s1059_s26 + $0x24] sm:$0xf] %vm454_vm0, %v714_v61  ;;  %v518_v43 = vmul.f32 %v1073_v45, %v1073_v45  ;;  %v519_v37 = vmul.f32 %v1061_v33, %v1061_v33 }
 0x12d   : > { %v759_v60 = vpop.f32.mrb[4].mxu0  ;;  %v1097_v62 = vpop.f32.mrb[4].mxu1  ;;  %v540_v42 = vsel %vm471_vm1, %v517_v23, 0.0  ;;  %v489_v47 = vsel %vm471_vm1, %v1073_v45, 0.0  ;;  %v491_v50 = vsel %vm471_vm1, %v1061_v33, 0.0  ;;  %v520_v51 = vmul.f32 %v1067_v41, %v1067_v41 }
 0x12e   : > { %v529_v1 = vadd.f32 %v528_v59, %v527_v58  ;;  %v711_v2 = vpack.c.bf16 %v759_v60, %v759_v60  ;;  %v343_v3 = vpop.f32.mrb[5].mxu0  ;;  %v375_v4 = vpop.f32.mrb[5].mxu1  ;;  %v478_v6 = vadd.f32 %v477_v63, %v476_v57  ;;  %v515_v18 = vmul.f32 %v759_v60, %v759_v60 }
 0x12f   : > { %v709_v5 = vpack.c.bf16 %v343_v3, %v343_v3  ;;  %v479_v7 = vsel %vm471_vm1, %v343_v3, 0.0  ;;  %v513_v8 = vmul.f32 %v343_v3, %v343_v3  ;;  %v760_v9 = vpop.f32.mrb[6].mxu0  ;;  %v1104_v10 = vpop.f32.mrb[6].mxu1  ;;  %v719_v24 = vpack.c.bf16 %v1097_v62, %v1097_v62 }
 0x130   : > { %461 = vst.msk [vmem:[%s1059_s26 + $0x18] sm:$0xf] %vm454_vm0, %v711_v2  ;;  %v531_v11 = vadd.f32 %v530_v0, %v529_v1  ;;  %v712_v12 = vpack.c.bf16 %v760_v9, %v760_v9  ;;  %v346_v13 = vpop.f32.mrb[7].mxu0  ;;  %v378_v14 = vpop.f32.mrb[7].mxu1  ;;  %v480_v15 = vadd.f32 %v479_v7, %v478_v6  ;;  %v483_v25 = vsel %vm471_vm1, %v759_v60, 0.0 }
 0x131   : > { %459 = vst.msk [vmem:[%s1059_s26 + $0x10] sm:$0xf] %vm454_vm0, %v709_v5  ;;  %v532_v16 = vsel %vm471_vm1, %v513_v8, 0.0  ;;  %v710_v17 = vpack.c.bf16 %v346_v13, %v346_v13  ;;  %v481_v20 = vsel %vm471_vm1, %v346_v13, 0.0  ;;  %v514_v21 = vmul.f32 %v346_v13, %v346_v13  ;;  %469 = vst.msk [vmem:[%s1059_s26 + $0x38] sm:$0xf] %vm454_vm0, %v719_v24 }
 0x132   : > { %v533_v19 = vadd.f32 %v532_v16, %v531_v11  ;;  %462 = vst.msk [vmem:[%s1059_s26 + $0x1c] sm:$0xf] %vm454_vm0, %v712_v12  ;;  %v482_v22 = vadd.f32 %v481_v20, %v480_v15  ;;  %v516_v26 = vmul.f32 %v760_v9, %v760_v9  ;;  %v717_v28 = vpack.c.bf16 %v375_v4, %v375_v4 }
 0x133   : > { %460 = vst.msk [vmem:[%s1059_s26 + $0x14] sm:$0xf] %vm454_vm0, %v710_v17  ;;  %v534_v27 = vsel %vm471_vm1, %v514_v21, 0.0  ;;  %v536_v31 = vsel %vm471_vm1, %v515_v18, 0.0  ;;  %v485_v32 = vsel %vm471_vm1, %v760_v9, 0.0  ;;  %v720_v35 = vpack.c.bf16 %v1104_v10, %v1104_v10 }
 0x134   : > { %v484_v29 = vadd.f32 %v483_v25, %v482_v22  ;;  %v535_v30 = vadd.f32 %v534_v27, %v533_v19  ;;  %467 = vst.msk [vmem:[%s1059_s26 + $0x30] sm:$0xf] %vm454_vm0, %v717_v28  ;;  %v718_v39 = vpack.c.bf16 %v378_v14, %v378_v14  ;;  %v538_v40 = vsel %vm471_vm1, %v516_v26, 0.0 }
 0x135   : > { %470 = vst.msk [vmem:[%s1059_s26 + $0x3c] sm:$0xf] %vm454_vm0, %v720_v35  ;;  %v542_v52 = vsel %vm471_vm1, %v518_v43, 0.0  ;;  %v521_v53 = vmul.f32 %v375_v4, %v375_v4  ;;  %v544_v56 = vsel %vm471_vm1, %v519_v37, 0.0  ;;  %v493_v57 = vsel %vm471_vm1, %v1067_v41, 0.0 }
 0x136   : > { %v537_v36 = vadd.f32 %v536_v31, %v535_v30  ;;  %v486_v38 = vadd.f32 %v485_v32, %v484_v29  ;;  %468 = vst.msk [vmem:[%s1059_s26 + $0x34] sm:$0xf] %vm454_vm0, %v718_v39  ;;  %v495_v45 = vsel %vm471_vm1, %v375_v4, 0.0  ;;  %v546_v60 = vsel %vm471_vm1, %v520_v51, 0.0 }
 0x137   : > { %v548_v33 = vsel %vm471_vm1, %v521_v53, 0.0  ;;  %v522_v61 = vmul.f32 %v378_v14, %v378_v14  ;;  %v523_v1 = vmul.f32 %v1097_v62, %v1097_v62  ;;  %v497_v2 = vsel %vm471_vm1, %v378_v14, 0.0 }
 0x138   : > { %v488_v44 = vadd.f32 %v487_v34, %v486_v38  ;;  %v539_v46 = vadd.f32 %v538_v40, %v537_v36  ;;  %v499_v41 = vsel %vm471_vm1, %v1097_v62, 0.0  ;;  %v524_v4 = vmul.f32 %v1104_v10, %v1104_v10 }
 0x139   : > { %v550_v6 = vsel %vm471_vm1, %v522_v61, 0.0  ;;  %v552_v9 = vsel %vm471_vm1, %v523_v1, 0.0  ;;  %v501_v11 = vsel %vm471_vm1, %v1104_v10, 0.0  ;;  %v562_v18 = vlaneseq }
 0x13a   : > { %v541_v48 = vadd.f32 %v540_v42, %v539_v46  ;;  %v490_v49 = vadd.f32 %v489_v47, %v488_v44  ;;  %v554_v14 = vsel %vm471_vm1, %v524_v4, 0.0 }
 0x13b   : > { %v563_v23 = vshrl.u32 %v562_v18, 7 }
 0x13c   : > { %v492_v54 = vadd.f32 %v491_v50, %v490_v49  ;;  %v543_v55 = vadd.f32 %v542_v52, %v541_v48 }
 0x13d   : > { %vm564_vm2 = vcmp.eq.s32.totalorder %v563_v23, 0 }
 0x13e   : > { %v545_v58 = vadd.f32 %v544_v56, %v543_v55  ;;  %v494_v59 = vadd.f32 %v493_v57, %v492_v54 }
 0x140   : > { %v496_v63 = vadd.f32 %v495_v45, %v494_v59  ;;  %v547_v0 = vadd.f32 %v546_v60, %v545_v58 }
 0x142   : > { %v549_v3 = vadd.f32 %v548_v33, %v547_v0  ;;  %v498_v5 = vadd.f32 %v497_v2, %v496_v63 }
 0x144   : > { %v500_v7 = vadd.f32 %v499_v41, %v498_v5  ;;  %v551_v8 = vadd.f32 %v550_v6, %v549_v3 }
 0x146   : > { %v502_v12 = vadd.f32 %v501_v11, %v500_v7  ;;  %v553_v13 = vadd.f32 %v552_v9, %v551_v8 }
 0x148   : > { %v503_v15 = vrot.slane %v502_v12, 4  ;;  %v555_v16 = vadd.f32 %v554_v14, %v553_v13 }
 0x14a   : > { %v504_v62 = vadd.f32 %v503_v15, %v502_v12  ;;  %v556_v17 = vrot.slane %v555_v16, 4 }
 0x14c   : > { %v505_v19 = vrot.slane %v504_v62, 2  ;;  %v557_v20 = vadd.f32 %v556_v17, %v555_v16 }
 0x14e   : > { %v506_v21 = vadd.f32 %v505_v19, %v504_v62  ;;  %v558_v22 = vrot.slane %v557_v20, 2 }
 0x150   : > { %v507_v24 = vrot.slane %v506_v21, 1  ;;  %v559_v25 = vadd.f32 %v558_v22, %v557_v20 }
 0x152   : > { %v560_v10 = vrot.slane %v559_v25, 1  ;;  %v508_v26 = vadd.f32 %v507_v24, %v506_v21 }
 0x154   : > { %v561_v27 = vadd.f32 %v560_v10, %v559_v25 }
 0x156   : > { %v565_v28 = vsel %vm564_vm2, %v508_v26, %v561_v27 }
 0x157   : > { %567 = vst.msk [vmem:[%s203_s15] sm:$0x3] %vm566_vm3, %v565_v28 }
 0x158 PF: > { %p14_p9 = scmp.ge.s32.totalorder %s945_s17, 6   ;;  %s1192_s12 = smov %s890_s13 }
 0x159   : > { %s1193_s13 = smov %s894_s14  ;;  %s1194_s14 = smov %s955_s20 }
 0x15a   : > { %s1195_s15 = smov %s945_s17  ;;  %16 = sbr.rel (!%p14_p9) target bundleno = 3 (0x3), region = 80 }
 0x161   :  { %604 = vsyncpa [#allocation3], 1 }
 0x162   :  { %606 = vsyncpa [#allocation3 + $0x1], 1 }

// kernel: bottleneck_forward.6
= control target key start
LH: loop header
LB: loop body
LE: loop exit
PB: predicated region body
PF: predicated region fallthrough
CT: control target
= control target key end

     0   :  { %s934_s18 = smov 0   ;;  %s1042_s0 = inlined_call_operand.vmem [shape: bf16[512,32], index: 0, kind: input, shape index: {}]   ;;  %s1043_s1 = inlined_call_operand.vmem [shape: f32[1,32], index: 1, kind: input, shape index: {}]   ;;  %s1044_s2 = inlined_call_operand.vmem [shape: f32[1,32], index: 2, kind: input, shape index: {}]   ;;  %s1045_s3 = inlined_call_operand.vmem [shape: bf16[32,128], index: 3, kind: input, shape index: {}]   ;;  %s1046_s4 = inlined_call_operand.vmem [shape: bf16[512,128], index: 4, kind: output, shape index: {0}]   ;;  %s1047_s5 = inlined_call_operand.vmem [shape: f32[4,2,128], index: 5, kind: output, shape index: {1}]  }
   0x1 LB: > { %s940_s19 = sadd.s32 4294967295, %s902_s18   ;;  %p714_p0 = scmp.ge.s32.totalorder %s902_s18, 1  ;;  %s902_s18 = sphi %s934_s18, %s16_s18  }
   0x2   : > { %p191_p1 = scmp.lt.s32.totalorder %s902_s18, 5 }
   0x4   : > { %p192_p2 = pnand %p714_p0, %p191_p1 }
   0x5   : > { %v894_v0 = vld [vmem:[%s1045_s3] sm:$0xff] (!%p192_p2)   ;;  %s715_s22 = sshll.u32 (!%p192_p2), %s940_s19, 4  ;;  %v895_v1 = vld [vmem:[%s1045_s3 + $0x8] sm:$0xff] (!%p192_p2)   ;;  %vm358_vm0 = vcmask (!%p192_p2), 261120   ;;  %p235_p4 = scmp.lt.s32.totalorder (!%p192_p2), %s940_s19, 3 }
   0x6   : > { %195 = sbr.rel (%p192_p2) target bundleno = 289 (0x121), region = 36  ;;  %p224_p3 = scmp.lt.s32.totalorder (!%p192_p2), %s715_s22, 63  ;;  %862 = vmatprep.subr.bf16.mxu0 (!%p192_p2), %v894_v0  ;;  %882 = vmatprep.subr.bf16.mxu1 (!%p192_p2), %v894_v0  ;;  %v964_v2 = vld [vmem:[%s1043_s1] ss:$0 sm:$0xff] (!%p192_p2) }
   0x7   : > { %863 = vmatpush3.bf16.msra.mxu0 (!%p192_p2), %v894_v0  ;;  %884 = vmatpush3.bf16.msra.mxu1 (!%p192_p2), %v894_v0  ;;  %v973_v11 = vld [vmem:[%s1044_s2] ss:$0 sm:$0xff] (!%p192_p2) }
   0x8   : > { %864 = vmatprep.subr.bf16.mxu0 (!%p192_p2), %v895_v1  ;;  %883 = vmatprep.subr.bf16.mxu1 (!%p192_p2), %v895_v1 }
   0xb   : > { %865 = vmatpush3.bf16.msra.mxu0 (!%p192_p2), %v895_v1  ;;  %885 = vmatpush3.bf16.msra.mxu1 (!%p192_p2), %v895_v1 }
   0xd   : > { %s1049_s22 = smov (!%p224_p3, %s715_s22), 63  ;;  %s1051_s19 = smov (!%p235_p4, %s940_s19), 3 }
   0xe   : > { %s716_s25 = sshll.u32 %s1049_s22, 2  ;;  %s719_s11 = sshll.u32 %s1051_s19, 1 }
   0xf   : > { %s959_s28 = scalar_lea.vmem %s1042_s0, %s716_s25  ;;  %s1024_s10 = scalar_lea.vmem %s1046_s4, %s716_s25 }
  0x10   : > { %v767_v3 = vld [vmem:[%s959_s28] sm:$0xff]   ;;  %v838_v4 = vld [vmem:[%s959_s28 + $0x8] sm:$0xff]   ;;  %v839_v5 = vld [vmem:[%s959_s28 + $0x10] sm:$0xff]   ;;  %s238_s14 = scalar_lea.vmem %s1047_s5, %s719_s11 }
  0x11   : > { %v768_v6 = vunpack.c.l.bf16 %v767_v3  ;;  %v769_v7 = vunpack.c.h.bf16 %v767_v3  ;;  %v772_v8 = vunpack.c.l.bf16 %v838_v4  ;;  %v773_v9 = vunpack.c.h.bf16 %v838_v4  ;;  %v840_v10 = vld [vmem:[%s959_s28 + $0x18] sm:$0xff]   ;;  %v841_v32 = vld [vmem:[%s959_s28 + $0x20] sm:$0xff]   ;;  %v842_v37 = vld [vmem:[%s959_s28 + $0x28] sm:$0xff]  }
  0x12   : > { %v776_v12 = vunpack.c.l.bf16 %v839_v5  ;;  %v777_v13 = vunpack.c.h.bf16 %v839_v5  ;;  %v780_v14 = vunpack.c.l.bf16 %v840_v10  ;;  %v781_v15 = vunpack.c.h.bf16 %v840_v10  ;;  %v843_v42 = vld [vmem:[%s959_s28 + $0x30] sm:$0xff]   ;;  %v844_v47 = vld [vmem:[%s959_s28 + $0x38] sm:$0xff]  }
  0x13   : > { %v279_v16 = vmul.f32 %v768_v6, %v964_v2  ;;  %v280_v17 = vmul.f32 %v769_v7, %v964_v2  ;;  %v281_v18 = vmul.f32 %v772_v8, %v964_v2  ;;  %v282_v19 = vmul.f32 %v773_v9, %v964_v2 }
  0x14   : > { %v283_v20 = vmul.f32 %v776_v12, %v964_v2  ;;  %v284_v21 = vmul.f32 %v777_v13, %v964_v2  ;;  %v285_v22 = vmul.f32 %v780_v14, %v964_v2  ;;  %v286_v23 = vmul.f32 %v781_v15, %v964_v2 }
  0x15   : > { %v302_v24 = vadd.f32 %v973_v11, %v279_v16  ;;  %v303_v25 = vadd.f32 %v973_v11, %v280_v17  ;;  %v304_v26 = vadd.f32 %v973_v11, %v281_v18  ;;  %v305_v27 = vadd.f32 %v973_v11, %v282_v19 }
  0x16   : > { %v306_v28 = vadd.f32 %v973_v11, %v283_v20  ;;  %v307_v29 = vadd.f32 %v973_v11, %v284_v21  ;;  %v308_v30 = vadd.f32 %v973_v11, %v285_v22  ;;  %v309_v31 = vadd.f32 %v973_v11, %v286_v23 }
  0x17   : > { %v318_v33 = vmax.f32 %v302_v24, 0.0  ;;  %v319_v34 = vmax.f32 %v303_v25, 0.0  ;;  %v320_v35 = vmax.f32 %v304_v26, 0.0  ;;  %v321_v36 = vmax.f32 %v305_v27, 0.0 }
  0x18   : > { %v322_v38 = vmax.f32 %v306_v28, 0.0  ;;  %v323_v39 = vmax.f32 %v307_v29, 0.0  ;;  %v324_v40 = vmax.f32 %v308_v30, 0.0  ;;  %v325_v41 = vmax.f32 %v309_v31, 0.0 }
  0x19   : > { %v334_v43 = vpack.c.bf16 %v319_v34, %v318_v33  ;;  %v335_v44 = vpack.c.bf16 %v321_v36, %v320_v35  ;;  %v784_v45 = vunpack.c.l.bf16 %v841_v32  ;;  %v785_v46 = vunpack.c.h.bf16 %v841_v32 }
  0x1a   : > { %v336_v48 = vpack.c.bf16 %v323_v39, %v322_v38  ;;  %v337_v49 = vpack.c.bf16 %v325_v41, %v324_v40  ;;  %v788_v50 = vunpack.c.l.bf16 %v842_v37  ;;  %v789_v51 = vunpack.c.h.bf16 %v842_v37 }
  0x1b   : > { %866 = vmatprep.mubr.msk.bf16.mxu0 %vm358_vm0, %v334_v43  ;;  %v287_v52 = vmul.f32 %v784_v45, %v964_v2  ;;  %v288_v53 = vmul.f32 %v785_v46, %v964_v2  ;;  %v792_v54 = vunpack.c.l.bf16 %v843_v42  ;;  %v793_v55 = vunpack.c.h.bf16 %v843_v42 }
  0x1c   : > { %867 = vmatmul.mubr.msk.bf16.vlgmr.msra.gmra.mrb[0].mxu0 %vm358_vm0, %v335_v44  ;;  %v289_v56 = vmul.f32 %v788_v50, %v964_v2  ;;  %v290_v57 = vmul.f32 %v789_v51, %v964_v2  ;;  %v796_v58 = vunpack.c.l.bf16 %v844_v47  ;;  %v797_v59 = vunpack.c.h.bf16 %v844_v47 }
  0x1d   : > { %870 = vmatprep.mubr.msk.bf16.mxu0 %vm358_vm0, %v336_v48  ;;  %v310_v60 = vadd.f32 %v973_v11, %v287_v52  ;;  %v311_v61 = vadd.f32 %v973_v11, %v288_v53  ;;  %v291_v62 = vmul.f32 %v792_v54, %v964_v2  ;;  %v292_v63 = vmul.f32 %v793_v55, %v964_v2 }
  0x1e   : > { %v312_v0 = vadd.f32 %v973_v11, %v289_v56  ;;  %v313_v1 = vadd.f32 %v973_v11, %v290_v57  ;;  %v293_v3 = vmul.f32 %v796_v58, %v964_v2  ;;  %v294_v4 = vmul.f32 %v797_v59, %v964_v2 }
  0x1f   : > { %v326_v5 = vmax.f32 %v310_v60, 0.0  ;;  %v327_v6 = vmax.f32 %v311_v61, 0.0  ;;  %v314_v7 = vadd.f32 %v973_v11, %v291_v62  ;;  %v315_v8 = vadd.f32 %v973_v11, %v292_v63 }
  0x20   : > { %v328_v9 = vmax.f32 %v312_v0, 0.0  ;;  %v329_v10 = vmax.f32 %v313_v1, 0.0  ;;  %v316_v12 = vadd.f32 %v973_v11, %v293_v3  ;;  %v317_v13 = vadd.f32 %v973_v11, %v294_v4 }
  0x21   : > { %v338_v14 = vpack.c.bf16 %v327_v6, %v326_v5  ;;  %v330_v15 = vmax.f32 %v314_v7, 0.0  ;;  %v331_v16 = vmax.f32 %v315_v8, 0.0 }
  0x22   : > { %v339_v17 = vpack.c.bf16 %v329_v10, %v328_v9  ;;  %v332_v18 = vmax.f32 %v316_v12, 0.0  ;;  %v333_v19 = vmax.f32 %v317_v13, 0.0 }
  0x23   : > { %874 = vmatprep.mubr.msk.bf16.mxu1 %vm358_vm0, %v338_v14  ;;  %v340_v2 = vpack.c.bf16 %v331_v16, %v330_v15 }
  0x24   : > { %871 = vmatmul.mubr.msk.bf16.gmra.mrb[4].mxu0 %vm358_vm0, %v337_v49  ;;  %875 = vmatmul.mubr.msk.bf16.vlgmr.msra.gmra.mrb[0].mxu1 %vm358_vm0, %v339_v17  ;;  %v341_v20 = vpack.c.bf16 %v333_v19, %v332_v18 }
  0x25   : > { %878 = vmatprep.mubr.msk.bf16.mxu1 %vm358_vm0, %v340_v2 }
  0x2c   : > { %879 = vmatmul.mubr.msk.bf16.gmra.mrb[4].mxu1 %vm358_vm0, %v341_v20 }
  0xef   : > { %v868_v11 = vpop.f32.mrb[0].mxu0 }
  0xf0   : > { %v417_v21 = vpop.f32.mrb[1].mxu0  ;;  %v583_v29 = vmul.f32 %v868_v11, %v868_v11 }
  0xf1   : > { %v869_v22 = vpop.f32.mrb[2].mxu0  ;;  %v581_v25 = vmul.f32 %v417_v21, %v417_v21 }
  0xf2   : > { %v806_v23 = vpack.c.bf16 %v869_v22, %v868_v11  ;;  %v420_v24 = vpop.f32.mrb[3].mxu0  ;;  %v584_v32 = vmul.f32 %v869_v22, %v869_v22 }
  0xf3   : > { %v801_v26 = vpack.c.bf16 %v420_v24, %v417_v21  ;;  %v560_v27 = vadd.f32 %v420_v24, %v417_v21  ;;  %v582_v28 = vmul.f32 %v420_v24, %v420_v24 }
  0xf4   : > { %845 = vst [vmem:[%s1024_s10 + $0x8] sm:$0xff] %v806_v23  }
  0xf5   : > { %802 = vst [vmem:[%s1024_s10] sm:$0xff] %v801_v26   ;;  %v561_v30 = vadd.f32 %v868_v11, %v560_v27  ;;  %v597_v31 = vadd.f32 %v582_v28, %v581_v25 }
  0xf7   : > { %v598_v33 = vadd.f32 %v597_v31, %v583_v29  ;;  %v872_v34 = vpop.f32.mrb[4].mxu0  ;;  %v562_v35 = vadd.f32 %v869_v22, %v561_v30  ;;  %v876_v36 = vpop.f32.mrb[0].mxu1  ;;  %v618_v29 = vlaneseq }
  0xf8   : > { %v433_v37 = vpop.f32.mrb[5].mxu0  ;;  %v449_v38 = vpop.f32.mrb[1].mxu1  ;;  %v587_v53 = vmul.f32 %v872_v34, %v872_v34  ;;  %v591_v8 = vmul.f32 %v876_v36, %v876_v36 }
  0xf9   : > { %v563_v39 = vadd.f32 %v562_v35, %v433_v37  ;;  %v585_v40 = vmul.f32 %v433_v37, %v433_v37  ;;  %v599_v41 = vadd.f32 %v598_v33, %v584_v32  ;;  %v873_v42 = vpop.f32.mrb[6].mxu0  ;;  %v877_v43 = vpop.f32.mrb[2].mxu1  ;;  %v589_v59 = vmul.f32 %v449_v38, %v449_v38 }
  0xfa   : > { %v816_v44 = vpack.c.bf16 %v873_v42, %v872_v34  ;;  %v436_v45 = vpop.f32.mrb[7].mxu0  ;;  %v826_v46 = vpack.c.bf16 %v877_v43, %v876_v36  ;;  %v452_v47 = vpop.f32.mrb[3].mxu1  ;;  %v588_v56 = vmul.f32 %v873_v42, %v873_v42  ;;  %v592_v12 = vmul.f32 %v877_v43, %v877_v43 }
  0xfb   : > { %v600_v48 = vadd.f32 %v599_v41, %v585_v40  ;;  %v811_v49 = vpack.c.bf16 %v436_v45, %v433_v37  ;;  %v564_v50 = vadd.f32 %v563_v39, %v436_v45  ;;  %v586_v51 = vmul.f32 %v436_v45, %v436_v45 }
  0xfc   : > { %847 = vst [vmem:[%s1024_s10 + $0x18] sm:$0xff] %v816_v44   ;;  %849 = vst [vmem:[%s1024_s10 + $0x28] sm:$0xff] %v826_v46   ;;  %v821_v52 = vpack.c.bf16 %v452_v47, %v449_v38  ;;  %v590_v6 = vmul.f32 %v452_v47, %v452_v47 }
  0xfd   : > { %846 = vst [vmem:[%s1024_s10 + $0x10] sm:$0xff] %v811_v49   ;;  %v565_v54 = vadd.f32 %v872_v34, %v564_v50  ;;  %v601_v55 = vadd.f32 %v600_v48, %v586_v51  ;;  %v619_v34 = vshrl.u32 %v618_v29, 7 }
  0xfe   : > { %848 = vst [vmem:[%s1024_s10 + $0x20] sm:$0xff] %v821_v52  }
  0xff   : > { %v602_v57 = vadd.f32 %v601_v55, %v587_v53  ;;  %v566_v58 = vadd.f32 %v873_v42, %v565_v54  ;;  %v880_v60 = vpop.f32.mrb[4].mxu1  ;;  %vm620_vm1 = vcmp.eq.s32.totalorder %v619_v34, 0 }
 0x100   : > { %v465_v61 = vpop.f32.mrb[5].mxu1  ;;  %v595_v20 = vmul.f32 %v880_v60, %v880_v60 }
 0x101   : > { %v567_v62 = vadd.f32 %v566_v58, %v449_v38  ;;  %v603_v63 = vadd.f32 %v602_v57, %v588_v56  ;;  %v881_v0 = vpop.f32.mrb[6].mxu1  ;;  %v593_v15 = vmul.f32 %v465_v61, %v465_v61 }
 0x102   : > { %v836_v1 = vpack.c.bf16 %v881_v0, %v880_v60  ;;  %v468_v3 = vpop.f32.mrb[7].mxu1  ;;  %v596_v22 = vmul.f32 %v881_v0, %v881_v0 }
 0x103   : > { %v604_v4 = vadd.f32 %v603_v63, %v589_v59  ;;  %v568_v5 = vadd.f32 %v567_v62, %v452_v47  ;;  %v831_v7 = vpack.c.bf16 %v468_v3, %v465_v61  ;;  %v594_v19 = vmul.f32 %v468_v3, %v468_v3 }
 0x104   : > { %851 = vst [vmem:[%s1024_s10 + $0x38] sm:$0xff] %v836_v1  }
 0x105   : > { %v569_v9 = vadd.f32 %v876_v36, %v568_v5  ;;  %v605_v10 = vadd.f32 %v604_v4, %v590_v6  ;;  %850 = vst [vmem:[%s1024_s10 + $0x30] sm:$0xff] %v831_v7  }
 0x107   : > { %v606_v13 = vadd.f32 %v605_v10, %v591_v8  ;;  %v570_v14 = vadd.f32 %v877_v43, %v569_v9 }
 0x109   : > { %v571_v16 = vadd.f32 %v570_v14, %v465_v61  ;;  %v607_v17 = vadd.f32 %v606_v13, %v592_v12 }
 0x10b   : > { %v608_v2 = vadd.f32 %v607_v17, %v593_v15  ;;  %v572_v18 = vadd.f32 %v571_v16, %v468_v3 }
 0x10d   : > { %v573_v11 = vadd.f32 %v880_v60, %v572_v18  ;;  %v609_v21 = vadd.f32 %v608_v2, %v594_v19 }
 0x10f   : > { %v574_v23 = vadd.f32 %v881_v0, %v573_v11  ;;  %v610_v24 = vadd.f32 %v609_v21, %v595_v20 }
 0x111   : > { %v575_v25 = vrot.slane %v574_v23, 4  ;;  %v611_v26 = vadd.f32 %v610_v24, %v596_v22 }
 0x113   : > { %v576_v27 = vadd.f32 %v575_v25, %v574_v23  ;;  %v612_v28 = vrot.slane %v611_v26, 4 }
 0x115   : > { %v577_v30 = vrot.slane %v576_v27, 2  ;;  %v613_v31 = vadd.f32 %v612_v28, %v611_v26 }
 0x117   : > { %v578_v32 = vadd.f32 %v577_v30, %v576_v27  ;;  %v614_v33 = vrot.slane %v613_v31, 2 }
 0x119   : > { %v579_v35 = vrot.slane %v578_v32, 1  ;;  %v615_v36 = vadd.f32 %v614_v33, %v613_v31 }
 0x11b   : > { %v616_v37 = vrot.slane %v615_v36, 1  ;;  %v580_v38 = vadd.f32 %v579_v35, %v578_v32 }
 0x11d   : > { %v617_v39 = vadd.f32 %v616_v37, %v615_v36 }
 0x11f   : > { %v621_v40 = vsel %vm620_vm1, %v580_v38, %v617_v39 }
 0x120   : > { %622 = vst [vmem:[%s238_s14] sm:$0x3] %v621_v40 }
 0x121 PF: > { %s16_s18 = sadd.s32 1, %s902_s18  }
 0x122   : > { %p13_p5 = scmp.ge.s32.totalorder %s16_s18, 6  }
 0x124   :  { %15 = sbr.rel (!%p13_p5) target bundleno = 1 (0x1), region = 78 }

// kernel: bottleneck_forward.5
= control target key start
LH: loop header
LB: loop body
LE: loop exit
PB: predicated region body
PF: predicated region fallthrough
CT: control target
= control target key end

     0   :  { %s1471_s18 = smov 0   ;;  %s1473_s19 = smov 0   ;;  %s2040_s0 = inlined_call_operand.vmem [shape: bf16[2,18,18,32], index: 0, kind: input, shape index: {}]   ;;  %s2041_s1 = inlined_call_operand.vmem [shape: f32[1,32], index: 1, kind: input, shape index: {}]   ;;  %s2042_s2 = inlined_call_operand.vmem [shape: f32[1,32], index: 2, kind: input, shape index: {}]   ;;  %s2043_s3 = inlined_call_operand.vmem [shape: bf16[288,32], index: 3, kind: input, shape index: {}]   ;;  %s2044_s4 = inlined_call_operand.vmem [shape: bf16[512,32], index: 4, kind: output, shape index: {0}]   ;;  %s2045_s5 = inlined_call_operand.vmem [shape: f32[8,2,32], index: 5, kind: output, shape index: {1}]  }
   0x1   :  { %s1475_s20 = smov 0   ;;  %s1477_s21 = smov 0  }
   0x2   :  { %s1479_s22 = smov 0  }
   0x3 LB: > { %s25_s23 = sadd.s32 1, %s1428_s20  ;;  %s28_s24 = sadd.s32 1, %s1432_s21  ;;  %s1436_s22 = sphi %s1479_s22, %s16_s22   ;;  %s1432_s21 = sphi %s1477_s21, %s2083_s21   ;;  %s1428_s20 = sphi %s1475_s20, %s2082_s20   ;;  %s1424_s19 = sphi %s1473_s19, %s2081_s19   ;;  %s1420_s18 = sphi %s1471_s18, %s2080_s18  }
   0x4   : > { %p26_p0 = scmp.ge.s32.totalorder %s25_s23, 4  ;;  %p1195_p1 = scmp.ge.s32.totalorder %s1436_s22, 1 }
   0x5   : > { %p210_p2 = scmp.lt.s32.totalorder %s1436_s22, 9 }
   0x6   : > { %s2085_s23 = smov (%p26_p0, %s25_s23), 0  ;;  %s2087_s24 = smov (!%p26_p0, %s28_s24), %s1432_s21 }
   0x7   : > { %p211_p3 = pnand %p1195_p1, %p210_p2  ;;  %p30_p4 = scmp.ge.s32.totalorder %s2087_s24, 2 }
   0x8   : > { %p246_p5 = scmp.lt.s32.totalorder (!%p211_p3), %s1424_s19, 1  ;;  %s1202_s25 = sshll.u32 (!%p211_p3), %s1420_s18, 2  ;;  %v366_v0 = vlaneseq (!%p211_p3)  ;;  %v1380_v2 = vld [vmem:[%s2043_s3 + $0x40] sm:$0xff] (!%p211_p3)   ;;  %v1382_v9 = vld [vmem:[%s2043_s3 + $0x48] sm:$0xff] (!%p211_p3)  }
   0x9   : > { %s2089_s24 = smov (%p30_p4, %s2087_s24), 0  ;;  %214 = sbr.rel (%p211_p3) target bundleno = 451 (0x1c3), region = 36 }
   0xa   : > { %v1507_v1 = vstv (!%p211_p3), %s1202_s25  ;;  %v1514_v4 = vshrl.u32 (!%p211_p3), %v366_v0, 7  ;;  %v1381_v5 = vld [vmem:[%s2043_s3] sm:$0xff] (!%p211_p3)   ;;  %s1239_s6 = smul.u32 (!%p211_p3), 48, %s1420_s18  ;;  %1262 = vmatprep.subr.bf16.mxu0 (!%p211_p3), %v1380_v2  ;;  %1320 = vmatprep.subr.bf16.mxu1 (!%p211_p3), %v1380_v2  ;;  %v1383_v59 = vld [vmem:[%s2043_s3 + $0x8] sm:$0xff] (!%p211_p3)   ;;  %s1438_s29 = smov (!%p211_p3), 64  }
   0xb   : > { %v365_v3 = vadd.s32 (!%p211_p3), 5, %v1507_v1  ;;  %v362_v6 = vadd.s32 (!%p211_p3), 2, %v1507_v1  ;;  %v361_v7 = vadd.s32 (!%p211_p3), 1, %v1507_v1  ;;  %v1523_v8 = vadd.s32 (!%p211_p3), 4, %v1507_v1  ;;  %1263 = vmatpush3.bf16.msra.mxu0 (!%p211_p3), %v1381_v5  ;;  %1328 = vmatpush3.bf16.msra.mxu1 (!%p211_p3), %v1381_v5  ;;  %v1537_v11 = vld [vmem:[%s2041_s1] ss:$0 sm:$0xff] (!%p211_p3) }
   0xc   : > { %v1529_v10 = vadd.s32 (!%p211_p3), 3, %v1507_v1  ;;  %vm388_vm2 = vcmp.ge.s32.totalorder (!%p211_p3), %v1514_v4, 1  ;;  %v1541_v12 = vadd.s32 (!%p211_p3), 16, %v1514_v4  ;;  %1264 = vmatprep.subr.bf16.mxu0 (!%p211_p3), %v1382_v9  ;;  %1321 = vmatprep.subr.bf16.mxu1 (!%p211_p3), %v1382_v9  ;;  %vm370_vm9 = vcmp.ge.s32.totalorder (!%p211_p3), %v1507_v1, 1  ;;  %v1556_v21 = vld [vmem:[%s2042_s2] ss:$0 sm:$0xff] (!%p211_p3) }
   0xd   : > { %vm375_vm0 = vcmp.ge.s32.totalorder (!%p211_p3), %v365_v3, 1  ;;  %vm381_vm1 = vcmp.le.s32.totalorder (!%p211_p3), %v365_v3, 16  ;;  %vm372_vm3 = vcmp.ge.s32.totalorder (!%p211_p3), %v362_v6, 1  ;;  %vm378_vm4 = vcmp.le.s32.totalorder (!%p211_p3), %v362_v6, 16  ;;  %v1384_v9 = vld [vmem:[%s2043_s3 + $0x50] sm:$0xff] (!%p211_p3)   ;;  %s1439_s11 = smov (!%p211_p3), 96  }
   0xe   : > { %vm371_vm5 = vcmp.ge.s32.totalorder (!%p211_p3), %v361_v7, 1  ;;  %vm377_vm6 = vcmp.le.s32.totalorder (!%p211_p3), %v361_v7, 16  ;;  %vm374_vm7 = vcmp.ge.s32.totalorder (!%p211_p3), %v1523_v8, 1  ;;  %vm380_vm8 = vcmp.le.s32.totalorder (!%p211_p3), %v1523_v8, 16  ;;  %vm1560_vm11 = vmand (!%p211_p3), %vm375_vm0, %vm381_vm1  ;;  %s1440_s14 = smov (!%p211_p3), 32  }
   0xf   : > { %vm376_vm10 = vcmp.le.s32.totalorder (!%p211_p3), %v1507_v1, 16  ;;  %vm411_vm12 = vcmp.le.s32.totalorder (!%p211_p3), %v1541_v12, 16  ;;  %vm1572_vm13 = vmand (!%p211_p3), %vm372_vm3, %vm378_vm4  ;;  %vm535_vm0 = vcmask (!%p211_p3), 1046528   ;;  %1265 = vmatpush3.bf16.msra.mxu0 (!%p211_p3), %v1383_v59  ;;  %1329 = vmatpush3.bf16.msra.mxu1 (!%p211_p3), %v1383_v59 }
  0x10   : > { %s247_s28 = scalar_select %p246_p5, %s1424_s19, 1  ;;  %vm1580_vm14 = vmand %vm371_vm5, %vm377_vm6  ;;  %vm373_vm6 = vcmp.ge.s32.totalorder %v1529_v10, 1  ;;  %1266 = vmatprep.subr.bf16.mxu0 %v1384_v9  ;;  %1322 = vmatprep.subr.bf16.mxu1 %v1384_v9 }
  0x11   : > { %vm1591_vm15 = vmand %vm1560_vm11, %vm388_vm2 }
  0x12   : > { %s1336_s7 = smul.u32 216, %s247_s28  ;;  %vm1601_vm1 = vmand %vm1572_vm13, %vm388_vm2 }
  0x13   : > { %vm1612_vm3 = vmand %vm1580_vm14, %vm388_vm2 }
  0x14   : > { %s250_s12 = scalar_lea.vmem %s2040_s0, %s1336_s7  ;;  %vm1622_vm4 = vmand %vm1580_vm14, %vm411_vm12 }
  0x15   : > { %s1543_s15 = scalar_lea.vmem %s250_s12, %s1239_s6  ;;  %vm1642_vm5 = vmand %vm374_vm7, %vm380_vm8 }
  0x16   : > { %v289_v13 = vld [vmem:[%s1543_s15 + $0x3c] sm:$0xff]   ;;  %v277_v19 = vld [vmem:[%s1543_s15 + $0xc] sm:$0xff]   ;;  %v279_v20 = vld [vmem:[%s1543_s15 + $0x14] sm:$0x1] }
  0x17   : > { %v1260_v14 = vld [vmem:[%s1543_s15 + $0x18] sm:$0xff]   ;;  %v307_v15 = vunpack.c.l.bf16 %v289_v13  ;;  %v308_v16 = vunpack.c.h.bf16 %v289_v13  ;;  %v295_v23 = vunpack.c.l.bf16 %v277_v19  ;;  %v296_v24 = vunpack.c.h.bf16 %v277_v19  ;;  %v1261_v26 = vld [vmem:[%s1543_s15 + $0x30] sm:$0xff]   ;;  %v282_v53 = vld [vmem:[%s1543_s15 + $0x20] sm:$0x1] }
  0x18   : > { %v1254_v17 = vunpack.c.l.bf16 %v1260_v14  ;;  %v1255_v18 = vunpack.c.h.bf16 %v1260_v14  ;;  %v297_v25 = vunpack.c.l.bf16 %v279_v20  ;;  %v1258_v36 = vunpack.c.l.bf16 %v1261_v26  ;;  %v288_v52 = vld [vmem:[%s1543_s15 + $0x38] sm:$0x1]  ;;  %v1249_v7 = vld [vmem:[%s1543_s15] sm:$0xff]   ;;  %v276_v8 = vld [vmem:[%s1543_s15 + $0x8] sm:$0x1] }
  0x19   : > { %v332_v27 = vmul.f32 %v1537_v11, %v307_v15  ;;  %v333_v28 = vmul.f32 %v1537_v11, %v308_v16  ;;  %v320_v32 = vmul.f32 %v1537_v11, %v295_v23  ;;  %v321_v33 = vmul.f32 %v1537_v11, %v296_v24  ;;  %vm1671_vm7 = vmand %vm370_vm9, %vm376_vm10  ;;  %v1691_v24 = vld [vmem:[%s1543_s15 + $0x24] sm:$0xff]  }
  0x1a   : > { %v323_v29 = vmul.f32 %v1254_v17, %v1537_v11  ;;  %v324_v30 = vmul.f32 %v1255_v18, %v1537_v11  ;;  %v322_v35 = vmul.f32 %v1537_v11, %v297_v25  ;;  %v1259_v46 = vunpack.c.h.bf16 %v1261_v26  ;;  %vm1685_vm8 = vmand %vm1642_vm5, %vm388_vm2  ;;  %v1385_v25 = vld [vmem:[%s2043_s3 + $0x10] sm:$0xff]  }
  0x1b   : > { %v357_v37 = vadd.f32 %v1556_v21, %v332_v27  ;;  %v358_v38 = vadd.f32 %v1556_v21, %v333_v28  ;;  %v345_v43 = vadd.f32 %v1556_v21, %v320_v32  ;;  %v346_v44 = vadd.f32 %v1556_v21, %v321_v33  ;;  %vm1702_vm9 = vmand %vm1642_vm5, %vm411_vm12  ;;  %v1386_v32 = vld [vmem:[%s2043_s3 + $0x58] sm:$0xff]   ;;  %1267 = vmatpush3.bf16.msra.mxu0 %v1385_v25 }
  0x1c   : > { %v348_v40 = vadd.f32 %v1556_v21, %v323_v29  ;;  %v349_v41 = vadd.f32 %v1556_v21, %v324_v30  ;;  %v347_v45 = vadd.f32 %v1556_v21, %v322_v35  ;;  %v329_v58 = vmul.f32 %v1258_v36, %v1537_v11  ;;  %1330 = vmatpush3.bf16.msra.mxu1 %v1385_v25  ;;  %vm1722_vm10 = vmand %vm1572_vm13, %vm411_vm12  ;;  %v1392_v29 = vld [vmem:[%s2043_s3 + $0x70] sm:$0xff]  }
  0x1d   : > { %v445_v47 = vmax.f32 %v357_v37, 0.0  ;;  %v446_v48 = vmax.f32 %v358_v38, 0.0  ;;  %v433_v54 = vmax.f32 %v345_v43, 0.0  ;;  %v434_v55 = vmax.f32 %v346_v44, 0.0  ;;  %v285_v37 = vld [vmem:[%s1543_s15 + $0x2c] sm:$0x1]  ;;  %1268 = vmatprep.subr.bf16.mxu0 %v1386_v32  ;;  %1323 = vmatprep.subr.bf16.mxu1 %v1386_v32 }
  0x1e   : > { %v436_v49 = vmax.f32 %v348_v40, 0.0  ;;  %v437_v50 = vmax.f32 %v349_v41, 0.0  ;;  %v435_v57 = vmax.f32 %v347_v45, 0.0  ;;  %v330_v15 = vmul.f32 %v1259_v46, %v1537_v11  ;;  %v1387_v38 = vld [vmem:[%s2043_s3 + $0x18] sm:$0xff]  }
  0x1f   : > { %v463_v60 = vsel %vm1591_vm15, %v445_v47, 0.0  ;;  %v464_v61 = vsel %vm1560_vm11, %v446_v48, 0.0  ;;  %vm379_vm15 = vcmp.le.s32.totalorder %v1529_v10, 16  ;;  %v451_v5 = vsel %vm1612_vm3, %v433_v54, 0.0  ;;  %v1388_v47 = vld [vmem:[%s2043_s3 + $0x60] sm:$0xff]   ;;  %1269 = vmatpush3.bf16.msra.mxu0 %v1387_v38 }
  0x20   : > { %v454_v62 = vsel %vm1601_vm1, %v436_v49, 0.0  ;;  %v455_v63 = vsel %vm1572_vm13, %v437_v50, 0.0  ;;  %v1648_v2 = vpack.c.bf16 %v464_v61, %v463_v60  ;;  %v452_v6 = vsel %vm1580_vm14, %v434_v55, 0.0  ;;  %vm1748_vm13 = vmand %vm1671_vm7, %vm388_vm2  ;;  %1331 = vmatpush3.bf16.msra.mxu1 %v1387_v38  ;;  %1270 = vmatprep.subr.bf16.mxu0 %v1388_v47 }
  0x21   : > { %v1650_v3 = vpack.c.bf16 %v455_v63, %v454_v62  ;;  %v1661_v13 = vpack.c.bf16 %v452_v6, %v451_v5  ;;  %v453_v14 = vsel %vm1622_vm4, %v435_v57, 0.0  ;;  %v354_v16 = vadd.f32 %v1556_v21, %v329_v58  ;;  %vm1760_vm14 = vmand %vm1671_vm7, %vm411_vm12  ;;  %v1389_v58 = vld [vmem:[%s2043_s3 + $0x20] sm:$0xff]   ;;  %1324 = vmatprep.subr.bf16.mxu1 %v1388_v47  ;;  %v1390_v63 = vld [vmem:[%s2043_s3 + $0x68] sm:$0xff]  }
  0x22   : > { %620 = vrot.lane.b32.xlu0 %v1648_v2, %s1438_s29  ;;  %v1679_v18 = vpack.c.bf16 %v453_v14, %v453_v14  ;;  %v306_v1 = vunpack.c.l.bf16 %v288_v52  ;;  %v300_v20 = vunpack.c.l.bf16 %v282_v53  ;;  %v355_v27 = vadd.f32 %v1556_v21, %v330_v15  ;;  %vm1783_vm1 = vmand %vm373_vm6, %vm379_vm15 }
  0x23   : > { %614 = vrot.lane.b32.xlu1 %v1650_v3, %s1438_s29  ;;  %v542_v23 = vrot.slane %v1650_v3, 1  ;;  %v539_v26 = vrot.slane %v1661_v13, 1  ;;  %v442_v28 = vmax.f32 %v354_v16, 0.0  ;;  %v1250_v30 = vunpack.c.l.bf16 %v1249_v7  ;;  %1271 = vmatpush3.bf16.msra.mxu0 %v1389_v58  ;;  %vm1811_vm4 = vmand %vm1783_vm1, %vm388_vm2 }
  0x24   : > { %v540_v33 = vrot.slane %v1679_v18, 1  ;;  %v331_v34 = vmul.f32 %v1537_v11, %v306_v1  ;;  %v325_v35 = vmul.f32 %v1537_v11, %v300_v20  ;;  %v1251_v36 = vunpack.c.h.bf16 %v1249_v7  ;;  %1332 = vmatpush3.bf16.msra.mxu1 %v1389_v58  ;;  %1272 = vmatprep.subr.bf16.mxu0 %v1390_v63  ;;  %vm1837_vm2 = vmand %vm1783_vm1, %vm411_vm12 }
  0x25   : > { %v443_v39 = vmax.f32 %v355_v27, 0.0  ;;  %v460_v40 = vsel %vm1685_vm8, %v442_v28, 0.0  ;;  %v294_v42 = vunpack.c.l.bf16 %v276_v8  ;;  %v317_v43 = vmul.f32 %v1250_v30, %v1537_v11  ;;  %1325 = vmatprep.subr.bf16.mxu1 %v1390_v63 }
  0x26   : > { %v1730_v44 = vsel %vm535_vm0, %v539_v26, %v540_v33  ;;  %v356_v45 = vadd.f32 %v1556_v21, %v331_v34  ;;  %v350_v31 = vadd.f32 %v1556_v21, %v325_v35  ;;  %v318_v46 = vmul.f32 %v1251_v36, %v1537_v11  ;;  %v1393_v35 = vld [vmem:[%s2043_s3 + $0x30] sm:$0xff]  }
  0x27   : > { %598 = vrot.lane.b32.xlu1 %v1661_v13, %s1439_s11  ;;  %606 = vrot.lane.b32.xlu0 %v1730_v44, %s1440_s14  ;;  %v461_v48 = vsel %vm1642_vm5, %v443_v39, 0.0  ;;  %v319_v49 = vmul.f32 %v1537_v11, %v294_v42  ;;  %v342_v50 = vadd.f32 %v1556_v21, %v317_v43  ;;  %v301_v52 = vunpack.c.l.bf16 %v1691_v24  ;;  %vm429_vm5 = vmand %vm1560_vm11, %vm411_vm12 }
  0x28   : > { %v1753_v53 = vpack.c.bf16 %v461_v48, %v460_v40  ;;  %v444_v54 = vmax.f32 %v356_v45, 0.0  ;;  %v438_v55 = vmax.f32 %v350_v31, 0.0  ;;  %v343_v56 = vadd.f32 %v1556_v21, %v318_v46  ;;  %v1394_v48 = vld [vmem:[%s2043_s3 + $0x78] sm:$0xff]  }
  0x29   : > { %v344_v59 = vadd.f32 %v1556_v21, %v319_v49  ;;  %v430_v60 = vmax.f32 %v342_v50, 0.0  ;;  %v302_v61 = vunpack.c.h.bf16 %v1691_v24  ;;  %v303_v62 = vunpack.c.l.bf16 %v285_v37  ;;  %v1391_v24 = vld [vmem:[%s2043_s3 + $0x28] sm:$0xff]  }
  0x2a   : > { %v462_v0 = vsel %vm1702_vm9, %v444_v54, 0.0  ;;  %v562_v5 = vrot.slane %v1753_v53, 1  ;;  %v456_v6 = vsel %vm1722_vm10, %v438_v55, 0.0  ;;  %v431_v7 = vmax.f32 %v343_v56, 0.0  ;;  %1273 = vmatpush3.bf16.msra.mxu0 %v1391_v24  ;;  %1333 = vmatpush3.bf16.msra.mxu1 %v1391_v24 }
  0x2b   : > { %604 = vrot.lane.b32.xlu1 %v1753_v53, %s1439_s11  ;;  %v1787_v9 = vpack.c.bf16 %v462_v0, %v462_v0  ;;  %v1789_v14 = vpack.c.bf16 %v456_v6, %v456_v6  ;;  %v432_v15 = vmax.f32 %v344_v59, 0.0  ;;  %v448_v16 = vsel %vm1748_vm13, %v430_v60, 0.0  ;;  %1274 = vmatprep.subr.bf16.mxu0 %v1392_v29  ;;  %v291_v6 = vld [vmem:[%s1543_s15 + $0x44] sm:$0x1] }
  0x2c   : > { %v449_v19 = vsel %vm1671_vm7, %v431_v7, 0.0  ;;  %v326_v1 = vmul.f32 %v1537_v11, %v301_v52  ;;  %v327_v20 = vmul.f32 %v1537_v11, %v302_v61  ;;  %v328_v10 = vmul.f32 %v1537_v11, %v303_v62  ;;  %1326 = vmatprep.subr.bf16.mxu1 %v1392_v29  ;;  %v1395_v7 = vld [vmem:[%s2043_s3 + $0x38] sm:$0xff]  }
  0x2d   : > { %vm478_vm3 = vsmask.f32 7424  ;;  %v563_v25 = vrot.slane %v1787_v9, 1  ;;  %v543_v26 = vrot.slane %v1789_v14, 1  ;;  %v450_v17 = vsel %vm1760_vm14, %v432_v15, 0.0 }
  0x2e   : > { %v1805_v27 = vpack.c.bf16 %v449_v19, %v448_v16  ;;  %v467_v30 = vpack.c.bf16 %v450_v17, %v450_v17  ;;  %v351_v32 = vadd.f32 %v1556_v21, %v326_v1  ;;  %v352_v33 = vadd.f32 %v1556_v21, %v327_v20  ;;  %1275 = vmatpush3.bf16.msra.mxu0 %v1393_v35 }
  0x2f   : > { %v353_v34 = vadd.f32 %v1556_v21, %v328_v10  ;;  %v1825_v36 = vsel %vm535_vm0, %v562_v5, %v563_v25  ;;  %v1830_v37 = vsel %vm535_vm0, %v542_v23, %v543_v26  ;;  %v504_v46 = vshrl.u32 %v1650_v3, 16  ;;  %1276 = vmatprep.subr.bf16.mxu0 %v1394_v48  ;;  %1334 = vmatpush3.bf16.msra.mxu1 %v1393_v35 }
  0x30   : > { %v536_v38 = vrot.slane %v1805_v27, 1  ;;  %v480_v40 = vshrl.u32 %v1805_v27, 16  ;;  %612 = vrot.lane.b32.xlu0 %v1825_v36, %s1440_s14  ;;  %v537_v41 = vrot.slane %v467_v30, 1  ;;  %v439_v42 = vmax.f32 %v351_v32, 0.0  ;;  %1327 = vmatprep.subr.bf16.mxu1 %v1394_v48 }
  0x31   : > { %v440_v43 = vmax.f32 %v352_v33, 0.0  ;;  %v441_v23 = vmax.f32 %v353_v34, 0.0  ;;  %v482_v45 = vshll.u32 %v1805_v27, 16  ;;  %v487_v31 = vshll.u32 %v467_v30, 16  ;;  %v1888_v33 = vld [vmem:[%s2043_s3 + $0x80] sm:$0xff]  }
  0x32   : > { %v506_v47 = vshll.u32 %v1650_v3, 16  ;;  %v538_v49 = vsel %vm535_vm0, %v536_v38, %v537_v41  ;;  %v457_v50 = vsel %vm1811_vm4, %v439_v42, 0.0  ;;  %v511_v59 = vshll.u32 %v1789_v14, 16  ;;  %1277 = vmatpush3.bf16.msra.mxu0 %v1395_v7 }
  0x33   : > { %v458_v51 = vsel %vm1783_vm1, %v440_v43, 0.0  ;;  %v459_v52 = vsel %vm1837_vm2, %v441_v23, 0.0  ;;  %590 = vrot.lane.b32.xlu1 %v538_v49, %s1438_s29  ;;  %v484_v56 = vrot.slane %v482_v45, 1  ;;  %v489_v57 = vrot.slane %v487_v31, 1  ;;  %1335 = vmatpush3.bf16.msra.mxu1 %v1395_v7 }
  0x34   : > { %v1858_v54 = vpack.c.bf16 %v458_v51, %v457_v50  ;;  %v473_v55 = vpack.c.bf16 %v459_v52, %v459_v52  ;;  %608 = vrot.lane.b32.xlu0 %v1830_v37, %s1440_s14  ;;  %v508_v58 = vrot.slane %v506_v47, 1  ;;  %v492_v60 = vshrl.u32 %v1661_v13, 16  ;;  %1308 = vmatprep.subr.bf16.mxu1 %v1888_v33 }
  0x35   : > { %v494_v61 = vshll.u32 %v1661_v13, 16  ;;  %v485_v0 = vor.u32 %v484_v56, %v480_v40  ;;  %v513_v14 = vrot.slane %v511_v59, 1  ;;  %v499_v10 = vshll.u32 %v1679_v18, 16 }
  0x36   : > { %v545_v62 = vrot.slane %v1858_v54, 1  ;;  %v546_v63 = vrot.slane %v473_v55, 1  ;;  %v516_v5 = vshrl.u32 %v1858_v54, 16  ;;  %v509_v8 = vor.u32 %v508_v58, %v504_v46 }
  0x37   : > { %v518_v15 = vshll.u32 %v1858_v54, 16  ;;  %v523_v16 = vshll.u32 %v473_v55, 16  ;;  %v490_v1 = vsel %vm478_vm3, %v485_v0, %v489_v57  ;;  %v496_v20 = vrot.slane %v494_v61, 1 }
  0x38   : > { %v1873_v19 = vsel %vm535_vm0, %v545_v62, %v546_v63  ;;  %582 = vrot.lane.b32.xlu0 %v490_v1, %s1440_s14  ;;  %v309_v26 = vunpack.c.l.bf16 %v291_v6  ;;  %v1881_v17 = vsel %vm478_vm3, %v509_v8, %v513_v14  ;;  %v501_v29 = vrot.slane %v499_v10, 1 }
  0x39   : > { %596 = vrot.lane.b32.xlu1 %v1873_v19, %s1438_s29  ;;  %v520_v24 = vrot.slane %v518_v15, 1  ;;  %v525_v25 = vrot.slane %v523_v16, 1  ;;  %v497_v28 = vor.u32 %v496_v20, %v492_v60  ;;  %v568_v18 = vshll.u32 %v1648_v2, 16 }
  0x3a   : > { %v334_v32 = vmul.f32 %v1537_v11, %v309_v26  ;;  %v566_v39 = vshrl.u32 %v1648_v2, 16  ;;  %v579_v22 = vrot.slane %v1648_v2, 1  ;;  %v549_v2 = vshrl.u32 %v1753_v53, 16  ;;  %v1397_v26 = vld [vmem:[%s2043_s3 + $0x88] sm:$0xff]  }
  0x3b   : > { %v521_v30 = vor.u32 %v520_v24, %v516_v5  ;;  %v502_v11 = vsel %vm478_vm3, %v497_v28, %v501_v29  ;;  %v570_v40 = vrot.slane %v568_v18, 1  ;;  %v556_v47 = vshll.u32 %v1787_v9, 16 }
  0x3c   : > { %v359_v35 = vadd.f32 %v1556_v21, %v334_v32  ;;  %vm630_vm11 = vcmask 261120   ;;  %vm639_vm12 = vcmask 523264   ;;  %vm1011_vm6 = vcmask 257024  }
  0x3d   : > { %622 = vrot.lane.b32.xlu1 %v1881_v17, %s1439_s11  ;;  %v1893_v34 = vsel %vm478_vm3, %v521_v30, %v525_v25  ;;  %v571_v42 = vor.u32 %v570_v40, %v566_v39  ;;  %v558_v49 = vrot.slane %v556_v47, 1  ;;  %vm1070_vm15 = vcmp.eq.s32.totalorder %v1514_v4, 0 }
  0x3e   : > { %588 = vrot.lane.b32.xlu0 %v1893_v34, %s1440_s14  ;;  %v447_v38 = vmax.f32 %v359_v35, 0.0  ;;  %vm1072_vm7 = vcmask 254976  }
  0x40   : > { %v465_v41 = vsel %vm429_vm5, %v447_v38, 0.0 }
  0x41   : > { %584 = vrot.lane.b32.xlu1 %v502_v11, %s1440_s14  ;;  %v477_v21 = vpack.c.bf16 %v465_v41, %v465_v41 }
  0x43   : > { %v573_v43 = vshll.u32 %v477_v21, 16  ;;  %v580_v45 = vrot.slane %v477_v21, 1 }
  0x45   : > { %592 = vrot.lane.b32.xlu1 %v1730_v44, %s1438_s29  ;;  %v575_v23 = vrot.slane %v573_v43, 1  ;;  %v1918_v31 = vsel %vm535_vm0, %v579_v22, %v580_v45  ;;  %v551_v44 = vshll.u32 %v1753_v53, 16  ;;  %vm648_vm0 = vcmask 785408  }
  0x47   : > { %v576_v12 = vsel %vm478_vm3, %v571_v42, %v575_v23  ;;  %v553_v46 = vrot.slane %v551_v44, 1 }
  0x48   : > { %628 = vrot.lane.b32.xlu0 %v576_v12, %s1439_s11 }
  0x49   : > { %600 = vrot.lane.b32.xlu1 %v1650_v3, %s1439_s11  ;;  %v554_v48 = vor.u32 %v553_v46, %v549_v2 }
  0x4b   : > { %v559_v50 = vsel %vm478_vm3, %v554_v48, %v558_v49 }
  0x4c   : > { %616 = vrot.lane.b32.xlu0 %v1858_v54, %s1438_s29 }
  0x4d   : > { %586 = vrot.lane.b32.xlu1 %v1881_v17, %s1440_s14 }
  0x50   : > { %624 = vrot.lane.b32.xlu0 %v1893_v34, %s1439_s11 }
  0x51   : > { %594 = vrot.lane.b32.xlu1 %v1830_v37, %s1438_s29 }
  0x54   : > { %610 = vrot.lane.b32.xlu0 %v1873_v19, %s1440_s14  ;;  %s1197_s14 = sshll.u32 %s1424_s19, 2 }
  0x55   : > { %602 = vrot.lane.b32.xlu1 %v1858_v54, %s1439_s11  ;;  %s1979_s17 = sadd.s32 %s1420_s18, %s1197_s14 }
  0x56   : > { %s1198_s25 = sshll.u32 %s1979_s17, 3  ;;  %p263_p7 = scmp.lt.s32.totalorder %s1979_s17, 7 }
  0x57   : > { %p254_p6 = scmp.lt.s32.totalorder %s1198_s25, 63 }
  0x58   : > { %618 = vrot.lane.b32.xlu0 %v1753_v53, %s1438_s29  ;;  %s2093_s17 = smov (!%p263_p7, %s1979_s17), 7 }
  0x59   : > { %s2091_s25 = smov (!%p254_p6, %s1198_s25), 63  ;;  %s1201_s28 = sshll.u32 %s2093_s17, 1 }
  0x5a   : > { %s1199_s26 = sshll.u32 %s2091_s25, 2  ;;  %s266_s7 = scalar_lea.vmem %s2045_s5, %s1201_s28 }
  0x5b   : > { %s1985_s27 = scalar_lea.vmem %s2044_s4, %s1199_s26 }
  0x5c   : > { %626 = vrot.lane.b32.xlu0 %v559_v50, %s1439_s11 }
  0x94   : > { %v621_v52 = vpop.permute.xlu0 %620 }
  0x95   : > { %v615_v51 = vpop.permute.xlu1 %614 }
  0x99   : > { %v599_v55 = vpop.permute.xlu1 %598  ;;  %v607_v56 = vpop.permute.xlu0 %606 }
  0x9a   : > { %v663_v62 = vsel %vm630_vm11, %v502_v11, %v607_v56 }
  0x9b   : > { %v674_v5 = vsel %vm639_vm12, %v663_v62, %v615_v51 }
  0x9d   : > { %v605_v9 = vpop.permute.xlu1 %604 }
  0xa2   : > { %v613_v57 = vpop.permute.xlu0 %612 }
  0xa5   : > { %v591_v58 = vpop.permute.xlu1 %590 }
  0xa6   : > { %v609_v59 = vpop.permute.xlu0 %608 }
  0xa7   : > { %v666_v32 = vsel %vm630_vm11, %v1881_v17, %v609_v59 }
  0xaa   : > { %v583_v61 = vpop.permute.xlu0 %582 }
  0xab   : > { %v597_v60 = vpop.permute.xlu1 %596  ;;  %v632_v53 = vsel %vm630_vm11, %v1805_v27, %v583_v61  ;;  %v672_v27 = vsel %vm630_vm11, %v559_v50, %v613_v57 }
  0xac   : > { %v641_v63 = vsel %vm639_vm12, %v632_v53, %v591_v58  ;;  %v680_v10 = vsel %vm639_vm12, %v672_v27, %v621_v52 }
  0xad   : > { %v650_v7 = vsel %vm648_vm0, %v641_v63, %v599_v55 }
  0xaf   : > { %v623_v0 = vpop.permute.xlu1 %622 }
  0xb0   : > { %v682_v6 = vsel %vm648_vm0, %v674_v5, %v623_v0  ;;  %v589_v14 = vpop.permute.xlu0 %588 }
  0xb1   : > { %881 = vmatprep.mubr.bf16.mxu0 %v682_v6  ;;  %v638_v15 = vsel %vm630_vm11, %v1858_v54, %v589_v14 }
  0xb2   : > { %882 = vmatmul.mubr.bf16.vlgmr.msra.gmra.mrb[0].mxu0 %v650_v7  ;;  %v647_v1 = vsel %vm639_vm12, %v638_v15, %v597_v60 }
  0xb3   : > { %v585_v8 = vpop.permute.xlu1 %584  ;;  %v659_v28 = vsel %vm648_vm0, %v647_v1, %v605_v9 }
  0xb4   : > { %v634_v30 = vsel %vm630_vm11, %v1661_v13, %v585_v8 }
  0xb7   : > { %v593_v16 = vpop.permute.xlu1 %592 }
  0xb8   : > { %v643_v18 = vsel %vm639_vm12, %v634_v30, %v593_v16 }
  0xba   : > { %v629_v20 = vpop.permute.xlu0 %628 }
  0xbb   : > { %v601_v24 = vpop.permute.xlu1 %600  ;;  %v691_v25 = vsel %vm648_vm0, %v680_v10, %v629_v20 }
  0xbc   : > { %905 = vmatprep.mubr.bf16.mxu1 %v691_v25 }
  0xbd   : > { %906 = vmatmul.mubr.bf16.vlgmr.msra.gmra.mrb[0].mxu1 %v659_v28 }
  0xbe   : > { %1309 = vmatpush3.bf16.msra.mxu1 %v1888_v33  ;;  %v617_v54 = vpop.permute.xlu0 %616  ;;  %1312 = vmatprep.mubr.msk.bf16.mxu1 %vm630_vm11, %v1830_v37  ;;  %v653_v33 = vsel %vm648_vm0, %v643_v18, %v601_v24 }
  0xbf   : > { %1310 = vmatprep.subr.bf16.mxu1 %v1397_v26  ;;  %v587_v29 = vpop.permute.xlu1 %586  ;;  %v676_v35 = vsel %vm639_vm12, %v666_v32, %v617_v54 }
  0xc0   : > { %v636_v40 = vsel %vm630_vm11, %v1650_v3, %v587_v29 }
  0xc2   : > { %1311 = vmatpush3.bf16.msra.mxu1 %v1397_v26  ;;  %v625_v11 = vpop.permute.xlu0 %624 }
  0xc3   : > { %v685_v38 = vsel %vm648_vm0, %v676_v35, %v625_v11  ;;  %v595_v37 = vpop.permute.xlu1 %594 }
  0xc4   : > { %889 = vmatprep.mubr.bf16.mxu0 %v685_v38  ;;  %v645_v21 = vsel %vm639_vm12, %v636_v40, %v595_v37 }
  0xc5   : > { %890 = vmatmul.mubr.bf16.gmra.mrb[4].mxu0 %v653_v33  ;;  %1313 = vmatmul.mubr.msk.bf16.vlgmr.msra.gmra.mrb[4].mxu1 %vm630_vm11, %v1873_v19 }
  0xc6   : > { %v611_v13 = vpop.permute.xlu0 %610  ;;  %1316 = vmatprep.mubr.msk.bf16.mxu1 %vm630_vm11, %v1825_v36 }
  0xc7   : > { %v603_v39 = vpop.permute.xlu1 %602  ;;  %v669_v41 = vsel %vm630_vm11, %v1893_v34, %v611_v13 }
  0xc8   : > { %v656_v36 = vsel %vm648_vm0, %v645_v21, %v603_v39 }
  0xca   : > { %v619_v17 = vpop.permute.xlu0 %618 }
  0xcb   : > { %v678_v19 = vsel %vm639_vm12, %v669_v41, %v619_v17 }
  0xcd   : > { %1317 = vmatmul.mubr.msk.bf16.gmra.mrb[8].mxu1 %vm630_vm11, %v1918_v31 }
  0xce   : > { %v627_v42 = vpop.permute.xlu0 %626 }
  0xcf   : > { %v688_v43 = vsel %vm648_vm0, %v678_v19, %v627_v42 }
  0xd0   : > { %897 = vmatprep.mubr.bf16.mxu0 %v688_v43 }
  0xd1   : > { %898 = vmatmul.mubr.bf16.gmra.mrb[8].mxu0 %v656_v36 }
 0x185   : > { %v1278_v23 = vpop.f32.mrb[0].mxu0 }
 0x186   : > { %v1279_v3 = vpop.f32.mrb[1].mxu0 }
 0x187   : > { %v1280_v12 = vadd.f32 %v1279_v3, %v1278_v23  ;;  %v1281_v22 = vpop.f32.mrb[2].mxu0 }
 0x188   : > { %v1282_v34 = vpop.f32.mrb[3].mxu0 }
 0x189   : > { %v1283_v45 = vadd.f32 %v1282_v34, %v1281_v22 }
 0x190   : > { %v1296_v31 = vpop.f32.mrb[0].mxu1 }
 0x191   : > { %v1297_v44 = vpop.f32.mrb[1].mxu1 }
 0x192   : > { %v1298_v2 = vadd.f32 %v1297_v44, %v1296_v31  ;;  %v1299_v46 = vpop.f32.mrb[2].mxu1 }
 0x193   : > { %v1300_v47 = vpop.f32.mrb[3].mxu1 }
 0x194   : > { %v1301_v48 = vadd.f32 %v1300_v47, %v1299_v46 }
 0x198   : > { %v1284_v49 = vpop.f32.mrb[4].mxu0  ;;  %v1314_v50 = vpop.f32.mrb[4].mxu1 }
 0x199   : > { %v1285_v51 = vpop.f32.mrb[5].mxu0  ;;  %v948_v52 = vpop.f32.mrb[5].mxu1 }
 0x19a   : > { %v1286_v55 = vadd.f32 %v1285_v51, %v1284_v49  ;;  %v949_v56 = vadd.f32 %v1280_v12, %v948_v52  ;;  %v1287_v9 = vpop.f32.mrb[6].mxu0  ;;  %v1315_v57 = vpop.f32.mrb[6].mxu1 }
 0x19b   : > { %v1288_v58 = vpop.f32.mrb[7].mxu0  ;;  %v951_v59 = vpop.f32.mrb[7].mxu1 }
 0x19c   : > { %v957_v60 = vadd.f32 %v1314_v50, %v1286_v55  ;;  %v1240_v61 = vpack.c.bf16 %v949_v56, %v949_v56  ;;  %v1041_v62 = vmul.f32 %v949_v56, %v949_v56  ;;  %v1289_v53 = vadd.f32 %v1288_v58, %v1287_v9 }
 0x19d   : > { %v952_v63 = vadd.f32 %v1283_v45, %v951_v59  ;;  %v1020_v6 = vsel %vm630_vm11, %v949_v56, 0.0 }
 0x19e   : > { %v1242_v0 = vpack.c.bf16 %v957_v60, %v957_v60  ;;  %v1043_v5 = vmul.f32 %v957_v60, %v957_v60  ;;  %1012 = vst.msk [vmem:[%s1985_s27] sm:$0xf] %vm1011_vm6, %v1240_v61  ;;  %v960_v7 = vadd.f32 %v1315_v57, %v1289_v53  ;;  %v1023_v16 = vsel %vm630_vm11, %v957_v60, 0.0 }
 0x19f   : > { %v1241_v8 = vpack.c.bf16 %v952_v63, %v952_v63  ;;  %v1021_v14 = vsel %vm630_vm11, %v952_v63, 0.0  ;;  %v1042_v15 = vmul.f32 %v952_v63, %v952_v63  ;;  %v1049_v20 = vsel %vm630_vm11, %v1041_v62, 0.0 }
 0x1a0   : > { %1014 = vst.msk [vmem:[%s1985_s27 + $0x8] sm:$0xf] %vm1011_vm6, %v1242_v0  ;;  %v1022_v27 = vadd.f32 %v1021_v14, %v1020_v6  ;;  %v1318_v1 = vpop.f32.mrb[8].mxu1  ;;  %v1243_v10 = vpack.c.bf16 %v960_v7, %v960_v7  ;;  %v1044_v24 = vmul.f32 %v960_v7, %v960_v7  ;;  %v1052_v32 = vsel %vm630_vm11, %v1043_v5, 0.0 }
 0x1a1   : > { %1013 = vst.msk [vmem:[%s1985_s27 + $0x4] sm:$0xf] %vm1011_vm6, %v1241_v8  ;;  %v1050_v25 = vsel %vm630_vm11, %v1042_v15, 0.0  ;;  %v964_v26 = vpop.f32.mrb[9].mxu1  ;;  %v973_v29 = vadd.f32 %v1318_v1, %v1298_v2  ;;  %v1025_v11 = vsel %vm630_vm11, %v960_v7, 0.0 }
 0x1a2   : > { %v1024_v28 = vadd.f32 %v1023_v16, %v1022_v27  ;;  %v1051_v54 = vadd.f32 %v1050_v25, %v1049_v20  ;;  %v1319_v30 = vpop.f32.mrb[10].mxu1  ;;  %1015 = vst.msk [vmem:[%s1985_s27 + $0xc] sm:$0xf] %vm1011_vm6, %v1243_v10  ;;  %v1054_v13 = vsel %vm630_vm11, %v1044_v24, 0.0 }
 0x1a3   : > { %v976_v18 = vadd.f32 %v1319_v30, %v1301_v48  ;;  %v967_v35 = vpop.f32.mrb[11].mxu1  ;;  %v1246_v38 = vpack.c.bf16 %v973_v29, %v973_v29  ;;  %v1047_v34 = vmul.f32 %v973_v29, %v973_v29  ;;  %v1031_v49 = vsel %vm630_vm11, %v973_v29, 0.0 }
 0x1a4   : > { %v1053_v33 = vadd.f32 %v1052_v32, %v1051_v54  ;;  %v1290_v37 = vpop.f32.mrb[8].mxu0  ;;  %v1026_v40 = vadd.f32 %v1025_v11, %v1024_v28 }
 0x1a5   : > { %v1247_v17 = vpack.c.bf16 %v976_v18, %v976_v18  ;;  %v1291_v39 = vpop.f32.mrb[9].mxu0  ;;  %1018 = vst.msk [vmem:[%s1985_s27 + $0x18] sm:$0xf] %vm1011_vm6, %v1246_v38  ;;  %v1048_v50 = vmul.f32 %v976_v18, %v976_v18  ;;  %v1060_v56 = vsel %vm630_vm11, %v1047_v34, 0.0  ;;  %v1033_v9 = vsel %vm630_vm11, %v976_v18, 0.0 }
 0x1a6   : > { %v1292_v41 = vadd.f32 %v1291_v39, %v1290_v37  ;;  %v1055_v21 = vadd.f32 %v1054_v13, %v1053_v33  ;;  %v1293_v19 = vpop.f32.mrb[10].mxu0 }
 0x1a7   : > { %1019 = vst.msk [vmem:[%s1985_s27 + $0x1c] sm:$0xf] %vm1011_vm6, %v1247_v17  ;;  %v1294_v42 = vpop.f32.mrb[11].mxu0  ;;  %v1062_v59 = vsel %vm630_vm11, %v1048_v50, 0.0 }
 0x1a8   : > { %v965_v36 = vadd.f32 %v1292_v41, %v964_v26  ;;  %v1295_v43 = vadd.f32 %v1294_v42, %v1293_v19 }
 0x1aa   : > { %v1244_v23 = vpack.c.bf16 %v965_v36, %v965_v36  ;;  %v1027_v3 = vsel %vm630_vm11, %v965_v36, 0.0  ;;  %v1045_v12 = vmul.f32 %v965_v36, %v965_v36  ;;  %v968_v22 = vadd.f32 %v1295_v43, %v967_v35 }
 0x1ab   : > { %v1028_v45 = vadd.f32 %v1027_v3, %v1026_v40 }
 0x1ac   : > { %1016 = vst.msk [vmem:[%s1985_s27 + $0x10] sm:$0xf] %vm1011_vm6, %v1244_v23  ;;  %v1056_v31 = vsel %vm630_vm11, %v1045_v12, 0.0  ;;  %v1245_v44 = vpack.c.bf16 %v968_v22, %v968_v22  ;;  %v1029_v2 = vsel %vm630_vm11, %v968_v22, 0.0  ;;  %v1046_v46 = vmul.f32 %v968_v22, %v968_v22 }
 0x1ad   : > { %v1057_v47 = vadd.f32 %v1056_v31, %v1055_v21  ;;  %v1030_v48 = vadd.f32 %v1029_v2, %v1028_v45 }
 0x1ae   : > { %1017 = vst.msk [vmem:[%s1985_s27 + $0x14] sm:$0xf] %vm1011_vm6, %v1245_v44  ;;  %v1058_v51 = vsel %vm630_vm11, %v1046_v46, 0.0 }
 0x1af   : > { %v1032_v52 = vadd.f32 %v1031_v49, %v1030_v48  ;;  %v1059_v55 = vadd.f32 %v1058_v51, %v1057_v47 }
 0x1b1   : > { %v1034_v57 = vadd.f32 %v1033_v9, %v1032_v52  ;;  %v1061_v58 = vadd.f32 %v1060_v56, %v1059_v55 }
 0x1b3   : > { %v1035_v60 = vrot.slane %v1034_v57, 4  ;;  %v1063_v61 = vadd.f32 %v1062_v59, %v1061_v58 }
 0x1b5   : > { %v1036_v62 = vadd.f32 %v1035_v60, %v1034_v57  ;;  %v1064_v53 = vrot.slane %v1063_v61, 4 }
 0x1b7   : > { %v1037_v63 = vrot.slane %v1036_v62, 2  ;;  %v1065_v0 = vadd.f32 %v1064_v53, %v1063_v61 }
 0x1b9   : > { %v1038_v5 = vadd.f32 %v1037_v63, %v1036_v62  ;;  %v1066_v6 = vrot.slane %v1065_v0, 2 }
 0x1bb   : > { %v1039_v7 = vrot.slane %v1038_v5, 1  ;;  %v1067_v8 = vadd.f32 %v1066_v6, %v1065_v0 }
 0x1bd   : > { %v1068_v14 = vrot.slane %v1067_v8, 1  ;;  %v1040_v15 = vadd.f32 %v1039_v7, %v1038_v5 }
 0x1bf   : > { %v1069_v16 = vadd.f32 %v1068_v14, %v1067_v8 }
 0x1c1   : > { %v1071_v27 = vsel %vm1070_vm15, %v1040_v15, %v1069_v16 }
 0x1c2   : > { %1073 = vst.msk [vmem:[%s266_s7] sm:$0x3] %vm1072_vm7, %v1071_v27 }
 0x1c3 PF: > { %s16_s22 = sadd.s32 1, %s1436_s22   ;;  %s2080_s18 = smov %s1428_s20 }
 0x1c4   : > { %p13_p8 = scmp.ge.s32.totalorder %s16_s22, 10   ;;  %s2081_s19 = smov %s1432_s21 }
 0x1c5   : > { %s2082_s20 = smov %s2085_s23  ;;  %s2083_s21 = smov %s2089_s24 }
 0x1c6   :  { %15 = sbr.rel (!%p13_p8) target bundleno = 3 (0x3), region = 79 }

// kernel: bottleneck_forward.7
= control target key start
LH: loop header
LB: loop body
LE: loop exit
PB: predicated region body
PF: predicated region fallthrough
CT: control target
= control target key end

     0   :  { %9 = vsyncpa [#allocation3], 0  ;;  %s841_s0 = inlined_call_operand.vmem [shape: bf16[512,128], index: 0, kind: input, shape index: {}]   ;;  %s842_s1 = inlined_call_operand.vmem [shape: f32[512,128], index: 1, kind: input, shape index: {}]   ;;  %s843_s2 = inlined_call_operand.vmem [shape: f32[1,128], index: 2, kind: input, shape index: {}]   ;;  %s844_s3 = inlined_call_operand.vmem [shape: f32[1,128], index: 3, kind: input, shape index: {}]   ;;  %s845_s4 = inlined_call_operand.hbm [shape: f32[512,128], index: 4, kind: output, shape index: {}]  }
   0x1   :  { %11 = vsyncpa [#allocation3 + $0x1], 0  ;;  %s640_s15 = smov 0   ;;  %s642_s16 = smov 0  }
   0x2   :  { %s644_s17 = smov 0   ;;  %s646_s18 = smov 0  }
   0x3 LB: > { %s661_s19 = sadd.s32 4294967295, %s610_s18   ;;  %s451_s20 = sadd.s32 4294967294, %s610_s18   ;;  %s610_s18 = sphi %s646_s18, %s851_s18   ;;  %s606_s17 = sphi %s644_s17, %s850_s17   ;;  %s602_s16 = sphi %s642_s16, %s849_s16   ;;  %s598_s15 = sphi %s640_s15, %s848_s15  }
   0x4   : > { %s665_s21 = sadd.s32 1, %s610_s18   ;;  %s118_s22 = sadd.s32 1, %s606_s17 }
   0x5   : > { %s115_s23 = ssub.s32 %s610_s18, %s665_s21  ;;  %p128_p0 = scmp.ne.s32.totalorder %s606_s17, %s602_s16 }
   0x6   : > { %p116_p1 = scmp.eq.s32.totalorder %s115_s23, 0  ;;  %p129_p2 = scmp.eq.s32.totalorder %s661_s19, 3 }
   0x7   : > { %p134_p3 = scmp.ne.s32.totalorder %s602_s16, %s598_s15  ;;  %p135_p4 = scmp.eq.s32.totalorder %s451_s20, 3 }
   0x8   : > { %s676_s24 = scalar_select %p116_p1, %s606_s17, %s118_s22  }
   0x9   : > { %p678_p5 = por %p129_p2, %p128_p0  ;;  %p682_p6 = por %p135_p4, %p134_p3 }
   0xa   : > { %p454_p7 = scmp.ge.s32.totalorder %s610_s18, 1  ;;  %p177_p8 = scmp.lt.s32.totalorder %s610_s18, 5 }
   0xc   : > { %p178_p9 = pnand %p454_p7, %p177_p8 }
   0xd   : > { %s456_s27 = sshll.u32 (!%p178_p9), %s661_s19, 4  ;;  %v698_v1 = vld [vmem:[%s843_s2] ss:$0 sm:$0xff] (!%p178_p9)  ;;  %s205_s12 = sand.u32 (!%p178_p9), 1, %s602_s16  }
   0xe   : > { %181 = sbr.rel (%p178_p9) target bundleno = 63 (0x3f), region = 36  ;;  %p209_p10 = scmp.lt.s32.totalorder (!%p178_p9), %s456_s27, 63  ;;  %v710_v5 = vld [vmem:[%s844_s3] ss:$0 sm:$0xff] (!%p178_p9) }
   0xf   : > { %s722_s20 = sshll.u32 (!%p178_p9), %s205_s12, 7  ;;  %s467_s23 = sshll.u32 (!%p178_p9), %s661_s19, 11 }
  0x10   : > { %s746_s22 = scalar_lea.vmem (!%p178_p9), [#allocation2], %s722_s20  ;;  %s800_s30 = scalar_lea.sflag (!%p178_p9), [#allocation3], %s205_s12 }
  0x15   : > { %s853_s27 = smov (!%p209_p10, %s456_s27), 63 }
  0x16   : > { %s457_s28 = sshll.u32 %s853_s27, 2  ;;  %s459_s29 = sshll.u32 %s853_s27, 3 }
  0x17   : > { %s692_s6 = scalar_lea.vmem %s841_s0, %s457_s28  ;;  %s703_s11 = scalar_lea.vmem %s842_s1, %s459_s29 }
  0x18   : > { %v469_v0 = vld [vmem:[%s692_s6] sm:$0xff]   ;;  %v500_v4 = vld [vmem:[%s692_s6 + $0x8] sm:$0xff]   ;;  %v501_v8 = vld [vmem:[%s692_s6 + $0x10] sm:$0xff]   ;;  %s377_s27 = sshll.u32 %s746_s22, 4  ;;  %s788_s29 = scalar_lea.hbm %s845_s4, %s467_s23  ;;  %s790_s27 = int_to_ptr.vmem [resolvable:$true] %s377_s27 }
  0x19   : > { %v470_v2 = vunpack.c.l.bf16 %v469_v0  ;;  %v471_v3 = vunpack.c.h.bf16 %v469_v0  ;;  %v474_v6 = vunpack.c.l.bf16 %v500_v4  ;;  %v475_v7 = vunpack.c.h.bf16 %v500_v4  ;;  %v502_v13 = vld [vmem:[%s692_s6 + $0x18] sm:$0xff]   ;;  %v299_v14 = vld [vmem:[%s703_s11] sm:$0xff]  ;;  %v300_v15 = vld [vmem:[%s703_s11 + $0x8] sm:$0xff]  ;;  %s548_s5 = scalar_lea.vmem %s790_s27, 2048 }
  0x1a   : > { %v478_v11 = vunpack.c.l.bf16 %v501_v8  ;;  %v479_v12 = vunpack.c.h.bf16 %v501_v8  ;;  %v482_v18 = vunpack.c.l.bf16 %v502_v13  ;;  %v483_v19 = vunpack.c.h.bf16 %v502_v13  ;;  %v301_v22 = vld [vmem:[%s703_s11 + $0x10] sm:$0xff]  ;;  %v302_v23 = vld [vmem:[%s703_s11 + $0x18] sm:$0xff]  ;;  %v303_v28 = vld [vmem:[%s703_s11 + $0x20] sm:$0xff]  ;;  %p549_p11 = scmp.ne.s32.totalorder %s790_s27, %s548_s5 }
  0x1b   : > { %v260_v9 = vmul.f32 %v470_v2, %v698_v1  ;;  %v261_v10 = vmul.f32 %v471_v3, %v698_v1  ;;  %v262_v16 = vmul.f32 %v474_v6, %v698_v1  ;;  %v263_v17 = vmul.f32 %v475_v7, %v698_v1  ;;  %v304_v29 = vld [vmem:[%s703_s11 + $0x28] sm:$0xff]  ;;  %v305_v36 = vld [vmem:[%s703_s11 + $0x30] sm:$0xff]  ;;  %v306_v37 = vld [vmem:[%s703_s11 + $0x38] sm:$0xff] }
  0x1c   : > { %v264_v24 = vmul.f32 %v478_v11, %v698_v1  ;;  %v265_v25 = vmul.f32 %v479_v12, %v698_v1  ;;  %v266_v30 = vmul.f32 %v482_v18, %v698_v1  ;;  %v267_v31 = vmul.f32 %v483_v19, %v698_v1  ;;  %v503_v42 = vld [vmem:[%s692_s6 + $0x20] sm:$0xff]   ;;  %v504_v47 = vld [vmem:[%s692_s6 + $0x28] sm:$0xff]   ;;  %v505_v52 = vld [vmem:[%s692_s6 + $0x30] sm:$0xff]   ;;  %p550_p12 = pnand %p549_p11, %p678_p5 }
  0x1d   : > { %v283_v20 = vadd.f32 %v710_v5, %v260_v9  ;;  %v284_v21 = vadd.f32 %v710_v5, %v261_v10  ;;  %v285_v26 = vadd.f32 %v710_v5, %v262_v16  ;;  %v286_v27 = vadd.f32 %v710_v5, %v263_v17  ;;  %v506_v57 = vld [vmem:[%s692_s6 + $0x38] sm:$0xff]   ;;  %v307_v3 = vld [vmem:[%s703_s11 + $0x40] sm:$0xff]  ;;  %v308_v4 = vld [vmem:[%s703_s11 + $0x48] sm:$0xff]  ;;  %s612_s6 = smov [#allocation2]  }
  0x1e   : > { %v287_v34 = vadd.f32 %v710_v5, %v264_v24  ;;  %v288_v35 = vadd.f32 %v710_v5, %v265_v25  ;;  %v289_v40 = vadd.f32 %v710_v5, %v266_v30  ;;  %v290_v41 = vadd.f32 %v710_v5, %v267_v31  ;;  %v309_v12 = vld [vmem:[%s703_s11 + $0x50] sm:$0xff]  ;;  %v310_v13 = vld [vmem:[%s703_s11 + $0x58] sm:$0xff]  ;;  %v311_v18 = vld [vmem:[%s703_s11 + $0x60] sm:$0xff]  ;;  %p551_p13 = pneg %p550_p12  ;;  %s552_s7 = sshll.u32 %s612_s6, 4  ;;  %s553_s7 = int_to_ptr.vmem [resolvable:$false] %s552_s7 }
  0x1f   : > { %v315_v32 = vadd.f32 %v299_v14, %v283_v20  ;;  %v316_v33 = vadd.f32 %v300_v15, %v284_v21  ;;  %v317_v38 = vadd.f32 %v301_v22, %v285_v26  ;;  %v318_v39 = vadd.f32 %v302_v23, %v286_v27  ;;  %v312_v19 = vld [vmem:[%s703_s11 + $0x68] sm:$0xff]  ;;  %v313_v26 = vld [vmem:[%s703_s11 + $0x70] sm:$0xff]  ;;  %v314_v27 = vld [vmem:[%s703_s11 + $0x78] sm:$0xff]  ;;  %s554_s8 = scalar_lea.vmem %s553_s7, 4096  ;;  %p555_p0 = scmp.lt.s32.totalorder %s790_s27, %s553_s7 }
  0x20   : > { %v319_v45 = vadd.f32 %v303_v28, %v287_v34  ;;  %v320_v46 = vadd.f32 %v304_v29, %v288_v35  ;;  %v321_v50 = vadd.f32 %v305_v36, %v289_v40  ;;  %v322_v51 = vadd.f32 %v306_v37, %v290_v41  ;;  %p556_p1 = scmp.lt.s32.totalorder %s554_s8, %s548_s5 }
  0x21   : > { %v331_v43 = vmax.f32 %v315_v32, 0.0  ;;  %v332_v44 = vmax.f32 %v316_v33, 0.0  ;;  %v333_v48 = vmax.f32 %v317_v38, 0.0  ;;  %v334_v49 = vmax.f32 %v318_v39, 0.0 }
  0x22   : > { %v335_v53 = vmax.f32 %v319_v45, 0.0  ;;  %v336_v54 = vmax.f32 %v320_v46, 0.0  ;;  %v486_v55 = vunpack.c.l.bf16 %v503_v42  ;;  %v487_v56 = vunpack.c.h.bf16 %v503_v42  ;;  %p557_p2 = por %p556_p1, %p555_p0 }
  0x23   : > { %347 = vst [vmem:[%s746_s22] sm:$0xff] %v331_v43  ;;  %348 = vst [vmem:[%s746_s22 + $0x8] sm:$0xff] %v332_v44  ;;  %v337_v58 = vmax.f32 %v321_v50, 0.0  ;;  %v338_v59 = vmax.f32 %v322_v51, 0.0  ;;  %v490_v60 = vunpack.c.l.bf16 %v504_v47  ;;  %v491_v61 = vunpack.c.h.bf16 %v504_v47 }
  0x24   : > { %349 = vst [vmem:[%s746_s22 + $0x10] sm:$0xff] %v333_v48  ;;  %350 = vst [vmem:[%s746_s22 + $0x18] sm:$0xff] %v334_v49  ;;  %v268_v62 = vmul.f32 %v486_v55, %v698_v1  ;;  %v269_v63 = vmul.f32 %v487_v56, %v698_v1  ;;  %v494_v0 = vunpack.c.l.bf16 %v505_v52  ;;  %v495_v2 = vunpack.c.h.bf16 %v505_v52  ;;  %p558_p3 = pnand %p557_p2, %p551_p13 }
  0x25   : > { %351 = vst [vmem:[%s746_s22 + $0x20] sm:$0xff] %v335_v53  ;;  %352 = vst [vmem:[%s746_s22 + $0x28] sm:$0xff] %v336_v54  ;;  %v270_v6 = vmul.f32 %v490_v60, %v698_v1  ;;  %v271_v7 = vmul.f32 %v491_v61, %v698_v1  ;;  %v498_v8 = vunpack.c.l.bf16 %v506_v57  ;;  %v499_v9 = vunpack.c.h.bf16 %v506_v57 }
  0x26   : > { %353 = vst [vmem:[%s746_s22 + $0x30] sm:$0xff] %v337_v58  ;;  %354 = vst [vmem:[%s746_s22 + $0x38] sm:$0xff] %v338_v59  ;;  %v291_v10 = vadd.f32 %v710_v5, %v268_v62  ;;  %v292_v11 = vadd.f32 %v710_v5, %v269_v63  ;;  %v272_v14 = vmul.f32 %v494_v0, %v698_v1 }
  0x27   : > { %v273_v15 = vmul.f32 %v495_v2, %v698_v1  ;;  %v293_v16 = vadd.f32 %v710_v5, %v270_v6  ;;  %v294_v17 = vadd.f32 %v710_v5, %v271_v7  ;;  %v274_v20 = vmul.f32 %v498_v8, %v698_v1 }
  0x28   : > { %v275_v21 = vmul.f32 %v499_v9, %v698_v1  ;;  %v323_v22 = vadd.f32 %v307_v3, %v291_v10  ;;  %v324_v23 = vadd.f32 %v308_v4, %v292_v11  ;;  %v295_v24 = vadd.f32 %v710_v5, %v272_v14 }
  0x29   : > { %v296_v25 = vadd.f32 %v710_v5, %v273_v15  ;;  %v325_v28 = vadd.f32 %v309_v12, %v293_v16  ;;  %v326_v29 = vadd.f32 %v310_v13, %v294_v17  ;;  %v297_v30 = vadd.f32 %v710_v5, %v274_v20 }
  0x2a   : > { %v298_v31 = vadd.f32 %v710_v5, %v275_v21  ;;  %v339_v1 = vmax.f32 %v323_v22, 0.0  ;;  %v340_v32 = vmax.f32 %v324_v23, 0.0  ;;  %v327_v33 = vadd.f32 %v311_v18, %v295_v24 }
  0x2b   : > { %v328_v34 = vadd.f32 %v312_v19, %v296_v25  ;;  %v341_v35 = vmax.f32 %v325_v28, 0.0  ;;  %v342_v36 = vmax.f32 %v326_v29, 0.0  ;;  %v329_v37 = vadd.f32 %v313_v26, %v297_v30 }
  0x2c   : > { %v330_v38 = vadd.f32 %v314_v27, %v298_v31  ;;  %355 = vst [vmem:[%s746_s22 + $0x40] sm:$0xff] %v339_v1  ;;  %356 = vst [vmem:[%s746_s22 + $0x48] sm:$0xff] %v340_v32  ;;  %v343_v5 = vmax.f32 %v327_v33, 0.0 }
  0x2d   : > { %v344_v39 = vmax.f32 %v328_v34, 0.0  ;;  %357 = vst [vmem:[%s746_s22 + $0x50] sm:$0xff] %v341_v35  ;;  %358 = vst [vmem:[%s746_s22 + $0x58] sm:$0xff] %v342_v36  ;;  %v345_v40 = vmax.f32 %v329_v37, 0.0 }
  0x2e   : > { %v346_v41 = vmax.f32 %v330_v38, 0.0  ;;  %359 = vst [vmem:[%s746_s22 + $0x60] sm:$0xff] %v343_v5 }
  0x2f   : > { %360 = vst [vmem:[%s746_s22 + $0x68] sm:$0xff] %v344_v39  ;;  %361 = vst [vmem:[%s746_s22 + $0x70] sm:$0xff] %v345_v40 }
  0x30   : > { %362 = vst [vmem:[%s746_s22 + $0x78] sm:$0xff] %v346_v41 }
  0x31   : > { %561 = shalt.err (!%p558_p3)
}
  0x32   : > { %s562_s9 = scalar_lea.hbm %s788_s29, 2048  ;;  %s566_s12 = scalar_lea.hbm %s845_s4, 8192 }
  0x33   : > { %p563_p4 = scmp.ne.s32.totalorder %s788_s29, %s562_s9  ;;  %p567_p9 = scmp.lt.u32.totalorder %s788_s29, %s845_s4 }
  0x34   : > { %p568_p10 = scmp.lt.u32.totalorder %s566_s12, %s562_s9  ;;  %p570_p12 = scmp.lt.u32.totalorder %s562_s9, %s788_s29 }
  0x35   : > { %p564_p7 = pnand %p563_p4, %p678_p5 }
  0x36   : > { %p569_p11 = por %p568_p10, %p567_p9 }
  0x37   : > { %p565_p8 = pneg %p564_p7 }
  0x38   : > { %p571_p13 = por %p570_p12, %p569_p11 }
  0x3a   : > { %p572_p0 = pnand %p571_p13, %p565_p8 }
  0x3c   : > { %575 = shalt.err (!%p572_p0)
}
  0x3d   : > { %s613_s20 = smov 128   ;;  %s614_s22 = smov 8  }
  0x3e   : > { %507 = dma.vmem_to_hbm [thread:$0]  (%p678_p5), %s790_s27, 2048, %s788_s29, %s800_s30, %s613_s20, %s613_s20, %s614_s22  }
  0x3f PF: > { %p513_p1 = scmp.ge.s32.totalorder %s610_s18, 2  ;;  %s392_s23 = sand.u32 1, %s598_s15  }
  0x40   : > { %s393_s19 = scalar_lea.sflag [#allocation3], %s392_s23 }
  0x41   : > { %p510_p2 = pnand %p513_p1, %p682_p6 }
  0x43   : > { %593 = dma.done.wait (!%p510_p2), %s393_s19, 2048  }
  0x44   : > { %595 = vsyncadd (!%p510_p2), %s393_s19, 4294965248  ;;  %p14_p3 = scmp.ge.s32.totalorder %s665_s21, 6   ;;  %s848_s15 = smov %s602_s16 }
  0x45   : > { %s849_s16 = smov %s606_s17  ;;  %s850_s17 = smov %s676_s24 }
  0x46   : > { %s851_s18 = smov %s665_s21  ;;  %16 = sbr.rel (!%p14_p3) target bundleno = 3 (0x3), region = 74 }
  0x4d   :  { %398 = vsyncpa [#allocation3], 1 }
  0x4e   :  { %400 = vsyncpa [#allocation3 + $0x1], 1 }

</bundles_post_ra>
